<compile_context>
chip_gen: v7x
topology: tpu7x:2x2x1
jax: 0.10.0
libtpu: 0.0.40
codegen_flags: <defaults>
</compile_context>

<pallas_src>
import functools

import numpy as np
import jax
import jax.numpy as jnp
from jax import lax
from jax.experimental import pallas as pl
from jax.experimental.pallas import tpu as pltpu

EPS = 1e-5
LANE = 128
SUBLANE = 8


def _ceil_to(x, m):
    return ((x + m - 1) // m) * m


def _pad2d(x, rows, cols):
    r, c = x.shape
    return jnp.pad(x, ((0, rows - r), (0, cols - c)))


# ----------------------------------------------------------------------------
# Fused kernel
# ----------------------------------------------------------------------------
def _decoder_kernel(
    q_ref, m_ref, amat_ref, dmat_ref,
    g1_ref, b1_ref, w11_ref, c11_ref, w12_ref, c12_ref,          # BN1 + FFN1
    lg_ref, lb_ref,                                              # LayerNorm
    wqh_ref, bqh_ref, wkh_ref, bkh_ref, wvh_ref, bvh_ref,        # per-head QKV
    woh_ref, bo_ref,                                             # per-head out-proj
    g3_ref, b3_ref, w21_ref, c21_ref, w22_ref, c22_ref,          # BN3 + FFN2
    o_ref,
    ctx_s,                                                       # VMEM scratch
    *, total, dim, num_heads, n_mem, seq_len, lp, sp):
    nh = num_heads
    dh = dim // nh
    scale = float(dh) ** -0.5
    inv_t = 1.0 / float(total)
    inv_d = 1.0 / float(dim)
    Dp = o_ref.shape[1]                 # padded feature width (lane-dense)

    def bn_ffn_residual(x, g, b, w1, c1, w2, c2):
        # BatchNorm1d (training-mode batch stats, biased variance).  Using
        # sum / sum-of-squares divided by the TRUE row count keeps statistics
        # exact with zero-padded rows / feature columns.
        mean = jnp.sum(x, axis=0, keepdims=True) * inv_t
        var = jnp.maximum(jnp.sum(x * x, axis=0, keepdims=True) * inv_t
                          - mean * mean, 0.0)
        xn = (x - mean) * lax.rsqrt(var + EPS) * g + b
        hid = jnp.maximum(
            jnp.dot(xn, w1, preferred_element_type=jnp.float32) + c1, 0.0)
        return x + jnp.dot(hid, w2, preferred_element_type=jnp.float32) + c2

    # ---- stage 1: q = q + ffn1(bn1(q)) -------------------------------------
    x1 = bn_ffn_residual(q_ref[...], g1_ref[...], b1_ref[...],
                         w11_ref[...], c11_ref[...],
                         w12_ref[...], c12_ref[...])             # (Tp, Dp)

    # ---- emb_align via a constant one-hot scatter matmul (MXU) -------------
    qa = jnp.dot(amat_ref[...], x1,
                 preferred_element_type=jnp.float32)             # (N*Lp, Dp)

    # ---- LayerNorm over the TRUE feature width ------------------------------
    mu = jnp.sum(qa, axis=-1, keepdims=True) * inv_d
    lvar = jnp.maximum(jnp.sum(qa * qa, axis=-1, keepdims=True) * inv_d
                       - mu * mu, 0.0)
    qn = (qa - mu) * lax.rsqrt(lvar + EPS) * lg_ref[...] + lb_ref[...]

    # ---- per-head projections, batched over all memories at once -----------
    mem2 = m_ref[...]                                            # (N*Sp, Dmp)
    q_heads, k_heads, v_heads = [], [], []
    for h in range(nh):
        q_heads.append(
            (jnp.dot(qn, wqh_ref[h], preferred_element_type=jnp.float32)
             + bqh_ref[h]) * scale)                              # (N*Lp, dh)
        k_heads.append(
            jnp.dot(mem2, wkh_ref[h], preferred_element_type=jnp.float32)
            + bkh_ref[h])                                        # (N*Sp, dh)
        v_heads.append(
            jnp.dot(mem2, wvh_ref[h], preferred_element_type=jnp.float32)
            + bvh_ref[h])                                        # (N*Sp, dh)

    # key-padding mask for zero-padded memory tokens (hoisted out of loops)
    col = lax.broadcasted_iota(jnp.int32, (1, sp), 1)
    smask = jnp.where(col < seq_len, 0.0, -1e30).astype(jnp.float32)

    # ---- cross attention per memory (sublane-aligned scratch stores) -------
    bo = bo_ref[...]
    for i in range(n_mem):
        r0, s0 = i * lp, i * sp
        acc = jnp.zeros((lp, Dp), jnp.float32)
        for h in range(nh):
            qh = q_heads[h][r0:r0 + lp, :]                       # (Lp, dh)
            kh = k_heads[h][s0:s0 + sp, :]                       # (Sp, dh)
            vh = v_heads[h][s0:s0 + sp, :]                       # (Sp, dh)
            s = lax.dot_general(qh, kh, (((1,), (1,)), ((), ())),
                                preferred_element_type=jnp.float32) + smask
            s = s - jnp.max(s, axis=-1, keepdims=True)
            p = jnp.exp(s)
            p = p * pl.reciprocal(jnp.sum(p, axis=-1, keepdims=True),
                                  approx=True)
            ctx = jnp.dot(p, vh, preferred_element_type=jnp.float32)  # (Lp,dh)
            # per-head row-block of the output projection -> lands directly in
            # lane-dense (Lp, Dp) form, no in-kernel concat / lane placement.
            acc = acc + jnp.dot(ctx, woh_ref[h],
                                preferred_element_type=jnp.float32)
        ctx_s[r0:r0 + lp, :] = acc + bo                          # aligned store

    # ---- emb_dealign via a constant one-hot gather matmul (MXU) ------------
    y = jnp.dot(dmat_ref[...], ctx_s[...],
                preferred_element_type=jnp.float32)              # (Tp, Dp)

    # ---- stage 3: q = q + ffn2(bn3(q)) --------------------------------------
    o_ref[...] = bn_ffn_residual(y, g3_ref[...], b3_ref[...],
                                 w21_ref[...], c21_ref[...],
                                 w22_ref[...], c22_ref[...])


# ----------------------------------------------------------------------------
# Wrapper: pad to (8, 128) tiles, pre-split attention weights per head, build
# the static align/dealign one-hot matrices.
# ----------------------------------------------------------------------------
def parallel_decoder_forward(params, queries, memories,
                             num_queries_per_memory, num_heads):
    queries = jnp.asarray(queries, jnp.float32)
    memories = jnp.asarray(memories, jnp.float32)
    T, D = queries.shape
    N, S, Dm = memories.shape
    nums = tuple(int(n) for n in num_queries_per_memory)
    assert len(nums) == N and sum(nums) == T and D % num_heads == 0
    dh = D // num_heads

    Dp = _ceil_to(D, LANE)
    Dmp = _ceil_to(Dm, LANE)
    Tp = _ceil_to(T, SUBLANE)
    Sp = _ceil_to(S, SUBLANE)
    Lp = _ceil_to(max(nums), SUBLANE)

    # static one-hot align (N*Lp, Tp) / dealign (Tp, N*Lp) matrices
    amat_np = np.zeros((N * Lp, Tp), np.float32)
    off = 0
    for i, n in enumerate(nums):
        for j in range(n):
            amat_np[i * Lp + j, off + j] = 1.0
        off += n
    amat = jnp.asarray(amat_np)
    dmat = jnp.asarray(amat_np.T.copy())

    g1, b1 = params["norm1"]
    lg, lb = params["norm2"]
    g3, b3 = params["norm3"]
    w11, c11, w12, c12 = params["ffn1"]
    w21, c21, w22, c22 = params["ffn2"]
    wq, bq, wk, bk, wv, bv, wo, bo = params["attn"]
    H1p = _ceil_to(w11.shape[1], LANE)
    H2p = _ceil_to(w21.shape[1], LANE)

    def per_head_in(w, b, din_p):
        # (din, nh*dh) weight, (1, nh*dh) bias -> (nh, din_p, dh), (nh, 1, dh)
        din = w.shape[0]
        wh = jnp.pad(w.reshape(din, num_heads, dh).transpose(1, 0, 2),
                     ((0, 0), (0, din_p - din), (0, 0)))
        bh = b.reshape(1, num_heads, dh).transpose(1, 0, 2)
        return wh, bh

    wq_h, bq_h = per_head_in(wq, bq, Dp)
    wk_h, bk_h = per_head_in(wk, bk, Dmp)
    wv_h, bv_h = per_head_in(wv, bv, Dmp)
    # out-proj row blocks per head: (nh*dh, D) -> (nh, dh, Dp)
    wo_h = jnp.pad(wo.reshape(num_heads, dh, D), ((0, 0), (0, 0), (0, Dp - D)))

    q_p = _pad2d(queries, Tp, Dp)
    m_p = jnp.pad(memories,
                  ((0, 0), (0, Sp - S), (0, Dmp - Dm))).reshape(N * Sp, Dmp)

    operands = [
        q_p, m_p, amat, dmat,
        _pad2d(g1, 1, Dp), _pad2d(b1, 1, Dp),
        _pad2d(w11, Dp, H1p), _pad2d(c11, 1, H1p),
        _pad2d(w12, H1p, Dp), _pad2d(c12, 1, Dp),
        _pad2d(lg, 1, Dp), _pad2d(lb, 1, Dp),
        wq_h, bq_h, wk_h, bk_h, wv_h, bv_h,
        wo_h, _pad2d(bo, 1, Dp),
        _pad2d(g3, 1, Dp), _pad2d(b3, 1, Dp),
        _pad2d(w21, Dp, H1p if False else H2p), _pad2d(c21, 1, H2p),
        _pad2d(w22, H2p, Dp), _pad2d(c22, 1, Dp),
    ]

    kern = functools.partial(_decoder_kernel, total=T, dim=D,
                             num_heads=num_heads, n_mem=N, seq_len=S,
                             lp=Lp, sp=Sp)

    out_p = pl.pallas_call(
        kern,
        out_shape=jax.ShapeDtypeStruct((Tp, Dp), jnp.float32),
        scratch_shapes=[
            pltpu.VMEM((N * Lp, Dp), jnp.float32),    # aligned attn outputs
        ],
    )(*operands)
    return out_p[:T, :D]


# ----------------------------------------------------------------------------
# Pure-JAX reference (mirrors the PyTorch math) + align/dealign helpers
# ----------------------------------------------------------------------------
def emb_align_jax(queries, nums):
    max_num = max(nums)
    parts, off = [], 0
    for n in nums:
        seq = queries[off:off + n]
        pad = jnp.zeros((max_num - n, queries.shape[1]), queries.dtype)
        parts.append(jnp.concatenate([seq, pad], axis=0))
        off += n
    return jnp.stack(parts, axis=0)


def emb_dealign_jax(aligned, nums):
    return jnp.concatenate([aligned[i, :n] for i, n in enumerate(nums)], axis=0)


def ref_forward(params, queries, memories, nums, num_heads):
    def bn_ffn(x, norm_p, ffn_p):
        g, b = norm_p
        w1, c1, w2, c2 = ffn_p
        mu = x.mean(0, keepdims=True)
        var = ((x - mu) ** 2).mean(0, keepdims=True)
        xn = (x - mu) / jnp.sqrt(var + EPS) * g + b
        h = jnp.maximum(xn @ w1 + c1, 0.0)
        return x + (h @ w2 + c2)

    x = bn_ffn(queries, params["norm1"], params["ffn1"])
    xa = emb_align_jax(x, nums)
    lg, lb = params["norm2"]
    mu = xa.mean(-1, keepdims=True)
    var = ((xa - mu) ** 2).mean(-1, keepdims=True)
    qn = (xa - mu) / jnp.sqrt(var + EPS) * lg + lb
    wq, bq, wk, bk, wv, bv, wo, bo = params["attn"]
    N, L, D = xa.shape
    S = memories.shape[1]
    dh = D // num_heads
    q = (qn @ wq + bq).reshape(N, L, num_heads, dh).transpose(0, 2, 1, 3)
    k = (memories @ wk + bk).reshape(N, S, num_heads, dh).transpose(0, 2, 1, 3)
    v = (memories @ wv + bv).reshape(N, S, num_heads, dh).transpose(0, 2, 1, 3)
    s = jnp.einsum("nhld,nhsd->nhls", q * (dh ** -0.5), k)
    w = jax.nn.softmax(s, axis=-1)
    ctx = jnp.einsum("nhls,nhsd->nhld", w, v).transpose(0, 2, 1, 3).reshape(N, L, D)
    ctx = ctx @ wo + bo
    xd = emb_dealign_jax(ctx, nums)
    return bn_ffn(xd, params["norm3"], params["ffn2"])


# ----------------------------------------------------------------------------
if __name__ == "__main__":
    dim, num_heads, dim_ffn, dim_mem = 32, 4, 64, 32
    num_queries_per_memory = [5, 3]
    N, S = len(num_queries_per_memory), 6
    T = sum(num_queries_per_memory)

    key = jax.random.PRNGKey(0)
    ks = jax.random.split(key, 16)

    queries = jax.random.normal(ks[0], (T, dim), jnp.float32)
    memories = jax.random.normal(ks[1], (N, S, dim_mem), jnp.float32)

    def init_linear(k, din, dout):
        kw, kb = jax.random.split(k)
        w = jax.random.normal(kw, (din, dout), jnp.float32) / jnp.sqrt(din)
        b = jax.random.normal(kb, (1, dout), jnp.float32) * 0.01
        return w, b

    def init_norm(k, d):
        kg, kb = jax.random.split(k)
        g = 1.0 + 0.1 * jax.random.normal(kg, (1, d), jnp.float32)
        b = 0.1 * jax.random.normal(kb, (1, d), jnp.float32)
        return g, b

    params = {
        "norm1": init_norm(ks[2], dim),
        "norm2": init_norm(ks[3], dim),
        "norm3": init_norm(ks[4], dim),
        "ffn1": init_linear(ks[5], dim, dim_ffn) + init_linear(ks[6], dim_ffn, dim),
        "ffn2": init_linear(ks[7], dim, dim_ffn) + init_linear(ks[8], dim_ffn, dim),
        "attn": (init_linear(ks[9], dim, dim)
                 + init_linear(ks[10], dim_mem, dim)
                 + init_linear(ks[11], dim_mem, dim)
                 + init_linear(ks[12], dim, dim)),
    }

    out = parallel_decoder_forward(params, queries, memories,
                                   num_queries_per_memory, num_heads)
    out = jax.block_until_ready(out)

    ref = ref_forward(params, queries, memories, num_queries_per_memory, num_heads)
    ref = jax.block_until_ready(ref)

    assert out.shape == (T, dim), out.shape
    max_err = float(jnp.max(jnp.abs(out - ref)))
    tol = 3e-2 + 1e-2 * float(jnp.max(jnp.abs(ref)))
    if max_err > tol:
        raise AssertionError(
            f"Pallas kernel mismatch vs reference, max abs err = {max_err}")

    print("KERNEL_OK")
</pallas_src>

<mosaic_0001>
module attributes {stable_mosaic.version = 11 : i64} {
  func.func @_decoder_kernel(%arg0: memref<8x128xf32, #tpu.memory_space<vmem>>, %arg1: memref<16x128xf32, #tpu.memory_space<vmem>>, %arg2: memref<16x8xf32, #tpu.memory_space<vmem>>, %arg3: memref<8x16xf32, #tpu.memory_space<vmem>>, %arg4: memref<1x128xf32, #tpu.memory_space<vmem>>, %arg5: memref<1x128xf32, #tpu.memory_space<vmem>>, %arg6: memref<128x128xf32, #tpu.memory_space<vmem>>, %arg7: memref<1x128xf32, #tpu.memory_space<vmem>>, %arg8: memref<128x128xf32, #tpu.memory_space<vmem>>, %arg9: memref<1x128xf32, #tpu.memory_space<vmem>>, %arg10: memref<1x128xf32, #tpu.memory_space<vmem>>, %arg11: memref<1x128xf32, #tpu.memory_space<vmem>>, %arg12: memref<4x128x8xf32, #tpu.memory_space<vmem>>, %arg13: memref<4x1x8xf32, #tpu.memory_space<vmem>>, %arg14: memref<4x128x8xf32, #tpu.memory_space<vmem>>, %arg15: memref<4x1x8xf32, #tpu.memory_space<vmem>>, %arg16: memref<4x128x8xf32, #tpu.memory_space<vmem>>, %arg17: memref<4x1x8xf32, #tpu.memory_space<vmem>>, %arg18: memref<4x8x128xf32, #tpu.memory_space<vmem>>, %arg19: memref<1x128xf32, #tpu.memory_space<vmem>>, %arg20: memref<1x128xf32, #tpu.memory_space<vmem>>, %arg21: memref<1x128xf32, #tpu.memory_space<vmem>>, %arg22: memref<128x128xf32, #tpu.memory_space<vmem>>, %arg23: memref<1x128xf32, #tpu.memory_space<vmem>>, %arg24: memref<128x128xf32, #tpu.memory_space<vmem>>, %arg25: memref<1x128xf32, #tpu.memory_space<vmem>>, %arg26: memref<8x128xf32, #tpu.memory_space<vmem>>, %arg27: memref<16x128xf32, #tpu.memory_space<vmem>>) attributes {dimension_semantics = [], scalar_prefetch = 0 : i64, scratch_operands = 1 : i64, tpu.core_type = #tpu.core_type<tc>} {
    %c0 = arith.constant 0 : index
    %c0_0 = arith.constant 0 : index
    %0 = vector.load %arg0[%c0, %c0_0] : memref<8x128xf32, #tpu.memory_space<vmem>>, vector<8x128xf32>
    %c0_1 = arith.constant 0 : index
    %c0_2 = arith.constant 0 : index
    %1 = vector.load %arg4[%c0_1, %c0_2] : memref<1x128xf32, #tpu.memory_space<vmem>>, vector<1x128xf32>
    %c0_3 = arith.constant 0 : index
    %c0_4 = arith.constant 0 : index
    %2 = vector.load %arg5[%c0_3, %c0_4] : memref<1x128xf32, #tpu.memory_space<vmem>>, vector<1x128xf32>
    %c0_5 = arith.constant 0 : index
    %c0_6 = arith.constant 0 : index
    %3 = vector.load %arg6[%c0_5, %c0_6] : memref<128x128xf32, #tpu.memory_space<vmem>>, vector<128x128xf32>
    %c0_7 = arith.constant 0 : index
    %c0_8 = arith.constant 0 : index
    %4 = vector.load %arg7[%c0_7, %c0_8] : memref<1x128xf32, #tpu.memory_space<vmem>>, vector<1x128xf32>
    %c0_9 = arith.constant 0 : index
    %c0_10 = arith.constant 0 : index
    %5 = vector.load %arg8[%c0_9, %c0_10] : memref<128x128xf32, #tpu.memory_space<vmem>>, vector<128x128xf32>
    %c0_11 = arith.constant 0 : index
    %c0_12 = arith.constant 0 : index
    %6 = vector.load %arg9[%c0_11, %c0_12] : memref<1x128xf32, #tpu.memory_space<vmem>>, vector<1x128xf32>
    %cst = arith.constant dense<0.000000e+00> : vector<128xf32>
    %7 = vector.multi_reduction <add>, %0, %cst [0] : vector<8x128xf32> to vector<128xf32>
    %8 = vector.shape_cast %7 : vector<128xf32> to vector<1x128xf32>
    %cst_13 = arith.constant 1.250000e-01 : f32
    %9 = vector.broadcast %cst_13 : f32 to vector<1x128xf32>
    %10 = arith.mulf %8, %9 : vector<1x128xf32>
    %11 = arith.mulf %0, %0 : vector<8x128xf32>
    %cst_14 = arith.constant dense<0.000000e+00> : vector<128xf32>
    %12 = vector.multi_reduction <add>, %11, %cst_14 [0] : vector<8x128xf32> to vector<128xf32>
    %13 = vector.shape_cast %12 : vector<128xf32> to vector<1x128xf32>
    %cst_15 = arith.constant 1.250000e-01 : f32
    %14 = vector.broadcast %cst_15 : f32 to vector<1x128xf32>
    %15 = arith.mulf %13, %14 : vector<1x128xf32>
    %16 = arith.mulf %10, %10 : vector<1x128xf32>
    %17 = arith.subf %15, %16 : vector<1x128xf32>
    %cst_16 = arith.constant 0.000000e+00 : f32
    %18 = vector.broadcast %cst_16 : f32 to vector<1x128xf32>
    %19 = arith.maximumf %17, %18 : vector<1x128xf32>
    %20 = vector.broadcast %10 : vector<1x128xf32> to vector<8x128xf32>
    %21 = arith.subf %0, %20 : vector<8x128xf32>
    %cst_17 = arith.constant 9.99999974E-6 : f32
    %22 = vector.broadcast %cst_17 : f32 to vector<1x128xf32>
    %23 = arith.addf %19, %22 : vector<1x128xf32>
    %24 = math.rsqrt %23 : vector<1x128xf32>
    %25 = vector.broadcast %24 : vector<1x128xf32> to vector<8x128xf32>
    %26 = arith.mulf %21, %25 : vector<8x128xf32>
    %27 = vector.broadcast %1 : vector<1x128xf32> to vector<8x128xf32>
    %28 = arith.mulf %26, %27 : vector<8x128xf32>
    %29 = vector.broadcast %2 : vector<1x128xf32> to vector<8x128xf32>
    %30 = arith.addf %28, %29 : vector<8x128xf32>
    %cst_18 = arith.constant dense<0.000000e+00> : vector<8x128xf32>
    %31 = tpu.matmul %30, %3, %cst_18 {dimension_numbers = #tpu.dot_dimension_numbers<[1], [0], [0], [1], [0, 0, 1, 1], [], []>} : vector<8x128xf32>, vector<128x128xf32>, vector<8x128xf32> -> vector<8x128xf32>
    %32 = vector.broadcast %4 : vector<1x128xf32> to vector<8x128xf32>
    %33 = arith.addf %31, %32 : vector<8x128xf32>
    %cst_19 = arith.constant 0.000000e+00 : f32
    %34 = vector.broadcast %cst_19 : f32 to vector<8x128xf32>
    %35 = arith.maximumf %33, %34 : vector<8x128xf32>
    %cst_20 = arith.constant dense<0.000000e+00> : vector<8x128xf32>
    %36 = tpu.matmul %35, %5, %cst_20 {dimension_numbers = #tpu.dot_dimension_numbers<[1], [0], [0], [1], [0, 0, 1, 1], [], []>} : vector<8x128xf32>, vector<128x128xf32>, vector<8x128xf32> -> vector<8x128xf32>
    %37 = arith.addf %0, %36 : vector<8x128xf32>
    %38 = vector.broadcast %6 : vector<1x128xf32> to vector<8x128xf32>
    %39 = arith.addf %37, %38 : vector<8x128xf32>
    %c0_21 = arith.constant 0 : index
    %c0_22 = arith.constant 0 : index
    %40 = vector.load %arg2[%c0_21, %c0_22] : memref<16x8xf32, #tpu.memory_space<vmem>>, vector<16x8xf32>
    %cst_23 = arith.constant dense<0.000000e+00> : vector<16x128xf32>
    %41 = tpu.matmul %40, %39, %cst_23 {dimension_numbers = #tpu.dot_dimension_numbers<[1], [0], [0], [1], [0, 0, 1, 1], [], []>} : vector<16x8xf32>, vector<8x128xf32>, vector<16x128xf32> -> vector<16x128xf32>
    %cst_24 = arith.constant dense<0.000000e+00> : vector<16xf32>
    %42 = vector.multi_reduction <add>, %41, %cst_24 [1] : vector<16x128xf32> to vector<16xf32>
    %43 = vector.shape_cast %42 : vector<16xf32> to vector<16x1xf32>
    %cst_25 = arith.constant 3.125000e-02 : f32
    %44 = vector.broadcast %cst_25 : f32 to vector<16x1xf32>
    %45 = arith.mulf %43, %44 : vector<16x1xf32>
    %46 = arith.mulf %41, %41 : vector<16x128xf32>
    %cst_26 = arith.constant dense<0.000000e+00> : vector<16xf32>
    %47 = vector.multi_reduction <add>, %46, %cst_26 [1] : vector<16x128xf32> to vector<16xf32>
    %48 = vector.shape_cast %47 : vector<16xf32> to vector<16x1xf32>
    %cst_27 = arith.constant 3.125000e-02 : f32
    %49 = vector.broadcast %cst_27 : f32 to vector<16x1xf32>
    %50 = arith.mulf %48, %49 : vector<16x1xf32>
    %51 = arith.mulf %45, %45 : vector<16x1xf32>
    %52 = arith.subf %50, %51 : vector<16x1xf32>
    %cst_28 = arith.constant 0.000000e+00 : f32
    %53 = vector.broadcast %cst_28 : f32 to vector<16x1xf32>
    %54 = arith.maximumf %52, %53 : vector<16x1xf32>
    %55 = vector.broadcast %45 : vector<16x1xf32> to vector<16x128xf32>
    %56 = arith.subf %41, %55 : vector<16x128xf32>
    %cst_29 = arith.constant 9.99999974E-6 : f32
    %57 = vector.broadcast %cst_29 : f32 to vector<16x1xf32>
    %58 = arith.addf %54, %57 : vector<16x1xf32>
    %59 = math.rsqrt %58 : vector<16x1xf32>
    %60 = vector.broadcast %59 : vector<16x1xf32> to vector<16x128xf32>
    %61 = arith.mulf %56, %60 : vector<16x128xf32>
    %c0_30 = arith.constant 0 : index
    %c0_31 = arith.constant 0 : index
    %62 = vector.load %arg10[%c0_30, %c0_31] : memref<1x128xf32, #tpu.memory_space<vmem>>, vector<1x128xf32>
    %63 = vector.broadcast %62 : vector<1x128xf32> to vector<16x128xf32>
    %64 = arith.mulf %61, %63 : vector<16x128xf32>
    %c0_32 = arith.constant 0 : index
    %c0_33 = arith.constant 0 : index
    %65 = vector.load %arg11[%c0_32, %c0_33] : memref<1x128xf32, #tpu.memory_space<vmem>>, vector<1x128xf32>
    %66 = vector.broadcast %65 : vector<1x128xf32> to vector<16x128xf32>
    %67 = arith.addf %64, %66 : vector<16x128xf32>
    %c0_34 = arith.constant 0 : index
    %c0_35 = arith.constant 0 : index
    %68 = vector.load %arg1[%c0_34, %c0_35] : memref<16x128xf32, #tpu.memory_space<vmem>>, vector<16x128xf32>
    %c0_36 = arith.constant 0 : index
    %c0_37 = arith.constant 0 : index
    %c0_38 = arith.constant 0 : index
    %69 = vector.load %arg12[%c0_36, %c0_37, %c0_38] : memref<4x128x8xf32, #tpu.memory_space<vmem>>, vector<1x128x8xf32>
    %70 = vector.shape_cast %69 : vector<1x128x8xf32> to vector<128x8xf32>
    %cst_39 = arith.constant dense<0.000000e+00> : vector<16x8xf32>
    %71 = tpu.matmul %67, %70, %cst_39 {dimension_numbers = #tpu.dot_dimension_numbers<[1], [0], [0], [1], [0, 0, 1, 1], [], []>} : vector<16x128xf32>, vector<128x8xf32>, vector<16x8xf32> -> vector<16x8xf32>
    %c0_40 = arith.constant 0 : index
    %c0_41 = arith.constant 0 : index
    %c0_42 = arith.constant 0 : index
    %72 = vector.load %arg13[%c0_40, %c0_41, %c0_42] : memref<4x1x8xf32, #tpu.memory_space<vmem>>, vector<1x1x8xf32>
    %73 = vector.shape_cast %72 : vector<1x1x8xf32> to vector<1x8xf32>
    %74 = vector.broadcast %73 : vector<1x8xf32> to vector<16x8xf32>
    %75 = arith.addf %71, %74 : vector<16x8xf32>
    %cst_43 = arith.constant 0.353553385 : f32
    %76 = vector.broadcast %cst_43 : f32 to vector<16x8xf32>
    %77 = arith.mulf %75, %76 : vector<16x8xf32>
    %c0_44 = arith.constant 0 : index
    %c0_45 = arith.constant 0 : index
    %c0_46 = arith.constant 0 : index
    %78 = vector.load %arg14[%c0_44, %c0_45, %c0_46] : memref<4x128x8xf32, #tpu.memory_space<vmem>>, vector<1x128x8xf32>
    %79 = vector.shape_cast %78 : vector<1x128x8xf32> to vector<128x8xf32>
    %cst_47 = arith.constant dense<0.000000e+00> : vector<16x8xf32>
    %80 = tpu.matmul %68, %79, %cst_47 {dimension_numbers = #tpu.dot_dimension_numbers<[1], [0], [0], [1], [0, 0, 1, 1], [], []>} : vector<16x128xf32>, vector<128x8xf32>, vector<16x8xf32> -> vector<16x8xf32>
    %c0_48 = arith.constant 0 : index
    %c0_49 = arith.constant 0 : index
    %c0_50 = arith.constant 0 : index
    %81 = vector.load %arg15[%c0_48, %c0_49, %c0_50] : memref<4x1x8xf32, #tpu.memory_space<vmem>>, vector<1x1x8xf32>
    %82 = vector.shape_cast %81 : vector<1x1x8xf32> to vector<1x8xf32>
    %83 = vector.broadcast %82 : vector<1x8xf32> to vector<16x8xf32>
    %84 = arith.addf %80, %83 : vector<16x8xf32>
    %c0_51 = arith.constant 0 : index
    %c0_52 = arith.constant 0 : index
    %c0_53 = arith.constant 0 : index
    %85 = vector.load %arg16[%c0_51, %c0_52, %c0_53] : memref<4x128x8xf32, #tpu.memory_space<vmem>>, vector<1x128x8xf32>
    %86 = vector.shape_cast %85 : vector<1x128x8xf32> to vector<128x8xf32>
    %cst_54 = arith.constant dense<0.000000e+00> : vector<16x8xf32>
    %87 = tpu.matmul %68, %86, %cst_54 {dimension_numbers = #tpu.dot_dimension_numbers<[1], [0], [0], [1], [0, 0, 1, 1], [], []>} : vector<16x128xf32>, vector<128x8xf32>, vector<16x8xf32> -> vector<16x8xf32>
    %c0_55 = arith.constant 0 : index
    %c0_56 = arith.constant 0 : index
    %c0_57 = arith.constant 0 : index
    %88 = vector.load %arg17[%c0_55, %c0_56, %c0_57] : memref<4x1x8xf32, #tpu.memory_space<vmem>>, vector<1x1x8xf32>
    %89 = vector.shape_cast %88 : vector<1x1x8xf32> to vector<1x8xf32>
    %90 = vector.broadcast %89 : vector<1x8xf32> to vector<16x8xf32>
    %91 = arith.addf %87, %90 : vector<16x8xf32>
    %c1 = arith.constant 1 : index
    %c0_58 = arith.constant 0 : index
    %c0_59 = arith.constant 0 : index
    %92 = vector.load %arg12[%c1, %c0_58, %c0_59] : memref<4x128x8xf32, #tpu.memory_space<vmem>>, vector<1x128x8xf32>
    %93 = vector.shape_cast %92 : vector<1x128x8xf32> to vector<128x8xf32>
    %cst_60 = arith.constant dense<0.000000e+00> : vector<16x8xf32>
    %94 = tpu.matmul %67, %93, %cst_60 {dimension_numbers = #tpu.dot_dimension_numbers<[1], [0], [0], [1], [0, 0, 1, 1], [], []>} : vector<16x128xf32>, vector<128x8xf32>, vector<16x8xf32> -> vector<16x8xf32>
    %c1_61 = arith.constant 1 : index
    %c0_62 = arith.constant 0 : index
    %c0_63 = arith.constant 0 : index
    %95 = vector.load %arg13[%c1_61, %c0_62, %c0_63] : memref<4x1x8xf32, #tpu.memory_space<vmem>>, vector<1x1x8xf32>
    %96 = vector.shape_cast %95 : vector<1x1x8xf32> to vector<1x8xf32>
    %97 = vector.broadcast %96 : vector<1x8xf32> to vector<16x8xf32>
    %98 = arith.addf %94, %97 : vector<16x8xf32>
    %cst_64 = arith.constant 0.353553385 : f32
    %99 = vector.broadcast %cst_64 : f32 to vector<16x8xf32>
    %100 = arith.mulf %98, %99 : vector<16x8xf32>
    %c1_65 = arith.constant 1 : index
    %c0_66 = arith.constant 0 : index
    %c0_67 = arith.constant 0 : index
    %101 = vector.load %arg14[%c1_65, %c0_66, %c0_67] : memref<4x128x8xf32, #tpu.memory_space<vmem>>, vector<1x128x8xf32>
    %102 = vector.shape_cast %101 : vector<1x128x8xf32> to vector<128x8xf32>
    %cst_68 = arith.constant dense<0.000000e+00> : vector<16x8xf32>
    %103 = tpu.matmul %68, %102, %cst_68 {dimension_numbers = #tpu.dot_dimension_numbers<[1], [0], [0], [1], [0, 0, 1, 1], [], []>} : vector<16x128xf32>, vector<128x8xf32>, vector<16x8xf32> -> vector<16x8xf32>
    %c1_69 = arith.constant 1 : index
    %c0_70 = arith.constant 0 : index
    %c0_71 = arith.constant 0 : index
    %104 = vector.load %arg15[%c1_69, %c0_70, %c0_71] : memref<4x1x8xf32, #tpu.memory_space<vmem>>, vector<1x1x8xf32>
    %105 = vector.shape_cast %104 : vector<1x1x8xf32> to vector<1x8xf32>
    %106 = vector.broadcast %105 : vector<1x8xf32> to vector<16x8xf32>
    %107 = arith.addf %103, %106 : vector<16x8xf32>
    %c1_72 = arith.constant 1 : index
    %c0_73 = arith.constant 0 : index
    %c0_74 = arith.constant 0 : index
    %108 = vector.load %arg16[%c1_72, %c0_73, %c0_74] : memref<4x128x8xf32, #tpu.memory_space<vmem>>, vector<1x128x8xf32>
    %109 = vector.shape_cast %108 : vector<1x128x8xf32> to vector<128x8xf32>
    %cst_75 = arith.constant dense<0.000000e+00> : vector<16x8xf32>
    %110 = tpu.matmul %68, %109, %cst_75 {dimension_numbers = #tpu.dot_dimension_numbers<[1], [0], [0], [1], [0, 0, 1, 1], [], []>} : vector<16x128xf32>, vector<128x8xf32>, vector<16x8xf32> -> vector<16x8xf32>
    %c1_76 = arith.constant 1 : index
    %c0_77 = arith.constant 0 : index
    %c0_78 = arith.constant 0 : index
    %111 = vector.load %arg17[%c1_76, %c0_77, %c0_78] : memref<4x1x8xf32, #tpu.memory_space<vmem>>, vector<1x1x8xf32>
    %112 = vector.shape_cast %111 : vector<1x1x8xf32> to vector<1x8xf32>
    %113 = vector.broadcast %112 : vector<1x8xf32> to vector<16x8xf32>
    %114 = arith.addf %110, %113 : vector<16x8xf32>
    %c2 = arith.constant 2 : index
    %c0_79 = arith.constant 0 : index
    %c0_80 = arith.constant 0 : index
    %115 = vector.load %arg12[%c2, %c0_79, %c0_80] : memref<4x128x8xf32, #tpu.memory_space<vmem>>, vector<1x128x8xf32>
    %116 = vector.shape_cast %115 : vector<1x128x8xf32> to vector<128x8xf32>
    %cst_81 = arith.constant dense<0.000000e+00> : vector<16x8xf32>
    %117 = tpu.matmul %67, %116, %cst_81 {dimension_numbers = #tpu.dot_dimension_numbers<[1], [0], [0], [1], [0, 0, 1, 1], [], []>} : vector<16x128xf32>, vector<128x8xf32>, vector<16x8xf32> -> vector<16x8xf32>
    %c2_82 = arith.constant 2 : index
    %c0_83 = arith.constant 0 : index
    %c0_84 = arith.constant 0 : index
    %118 = vector.load %arg13[%c2_82, %c0_83, %c0_84] : memref<4x1x8xf32, #tpu.memory_space<vmem>>, vector<1x1x8xf32>
    %119 = vector.shape_cast %118 : vector<1x1x8xf32> to vector<1x8xf32>
    %120 = vector.broadcast %119 : vector<1x8xf32> to vector<16x8xf32>
    %121 = arith.addf %117, %120 : vector<16x8xf32>
    %cst_85 = arith.constant 0.353553385 : f32
    %122 = vector.broadcast %cst_85 : f32 to vector<16x8xf32>
    %123 = arith.mulf %121, %122 : vector<16x8xf32>
    %c2_86 = arith.constant 2 : index
    %c0_87 = arith.constant 0 : index
    %c0_88 = arith.constant 0 : index
    %124 = vector.load %arg14[%c2_86, %c0_87, %c0_88] : memref<4x128x8xf32, #tpu.memory_space<vmem>>, vector<1x128x8xf32>
    %125 = vector.shape_cast %124 : vector<1x128x8xf32> to vector<128x8xf32>
    %cst_89 = arith.constant dense<0.000000e+00> : vector<16x8xf32>
    %126 = tpu.matmul %68, %125, %cst_89 {dimension_numbers = #tpu.dot_dimension_numbers<[1], [0], [0], [1], [0, 0, 1, 1], [], []>} : vector<16x128xf32>, vector<128x8xf32>, vector<16x8xf32> -> vector<16x8xf32>
    %c2_90 = arith.constant 2 : index
    %c0_91 = arith.constant 0 : index
    %c0_92 = arith.constant 0 : index
    %127 = vector.load %arg15[%c2_90, %c0_91, %c0_92] : memref<4x1x8xf32, #tpu.memory_space<vmem>>, vector<1x1x8xf32>
    %128 = vector.shape_cast %127 : vector<1x1x8xf32> to vector<1x8xf32>
    %129 = vector.broadcast %128 : vector<1x8xf32> to vector<16x8xf32>
    %130 = arith.addf %126, %129 : vector<16x8xf32>
    %c2_93 = arith.constant 2 : index
    %c0_94 = arith.constant 0 : index
    %c0_95 = arith.constant 0 : index
    %131 = vector.load %arg16[%c2_93, %c0_94, %c0_95] : memref<4x128x8xf32, #tpu.memory_space<vmem>>, vector<1x128x8xf32>
    %132 = vector.shape_cast %131 : vector<1x128x8xf32> to vector<128x8xf32>
    %cst_96 = arith.constant dense<0.000000e+00> : vector<16x8xf32>
    %133 = tpu.matmul %68, %132, %cst_96 {dimension_numbers = #tpu.dot_dimension_numbers<[1], [0], [0], [1], [0, 0, 1, 1], [], []>} : vector<16x128xf32>, vector<128x8xf32>, vector<16x8xf32> -> vector<16x8xf32>
    %c2_97 = arith.constant 2 : index
    %c0_98 = arith.constant 0 : index
    %c0_99 = arith.constant 0 : index
    %134 = vector.load %arg17[%c2_97, %c0_98, %c0_99] : memref<4x1x8xf32, #tpu.memory_space<vmem>>, vector<1x1x8xf32>
    %135 = vector.shape_cast %134 : vector<1x1x8xf32> to vector<1x8xf32>
    %136 = vector.broadcast %135 : vector<1x8xf32> to vector<16x8xf32>
    %137 = arith.addf %133, %136 : vector<16x8xf32>
    %c3 = arith.constant 3 : index
    %c0_100 = arith.constant 0 : index
    %c0_101 = arith.constant 0 : index
    %138 = vector.load %arg12[%c3, %c0_100, %c0_101] : memref<4x128x8xf32, #tpu.memory_space<vmem>>, vector<1x128x8xf32>
    %139 = vector.shape_cast %138 : vector<1x128x8xf32> to vector<128x8xf32>
    %cst_102 = arith.constant dense<0.000000e+00> : vector<16x8xf32>
    %140 = tpu.matmul %67, %139, %cst_102 {dimension_numbers = #tpu.dot_dimension_numbers<[1], [0], [0], [1], [0, 0, 1, 1], [], []>} : vector<16x128xf32>, vector<128x8xf32>, vector<16x8xf32> -> vector<16x8xf32>
    %c3_103 = arith.constant 3 : index
    %c0_104 = arith.constant 0 : index
    %c0_105 = arith.constant 0 : index
    %141 = vector.load %arg13[%c3_103, %c0_104, %c0_105] : memref<4x1x8xf32, #tpu.memory_space<vmem>>, vector<1x1x8xf32>
    %142 = vector.shape_cast %141 : vector<1x1x8xf32> to vector<1x8xf32>
    %143 = vector.broadcast %142 : vector<1x8xf32> to vector<16x8xf32>
    %144 = arith.addf %140, %143 : vector<16x8xf32>
    %cst_106 = arith.constant 0.353553385 : f32
    %145 = vector.broadcast %cst_106 : f32 to vector<16x8xf32>
    %146 = arith.mulf %144, %145 : vector<16x8xf32>
    %c3_107 = arith.constant 3 : index
    %c0_108 = arith.constant 0 : index
    %c0_109 = arith.constant 0 : index
    %147 = vector.load %arg14[%c3_107, %c0_108, %c0_109] : memref<4x128x8xf32, #tpu.memory_space<vmem>>, vector<1x128x8xf32>
    %148 = vector.shape_cast %147 : vector<1x128x8xf32> to vector<128x8xf32>
    %cst_110 = arith.constant dense<0.000000e+00> : vector<16x8xf32>
    %149 = tpu.matmul %68, %148, %cst_110 {dimension_numbers = #tpu.dot_dimension_numbers<[1], [0], [0], [1], [0, 0, 1, 1], [], []>} : vector<16x128xf32>, vector<128x8xf32>, vector<16x8xf32> -> vector<16x8xf32>
    %c3_111 = arith.constant 3 : index
    %c0_112 = arith.constant 0 : index
    %c0_113 = arith.constant 0 : index
    %150 = vector.load %arg15[%c3_111, %c0_112, %c0_113] : memref<4x1x8xf32, #tpu.memory_space<vmem>>, vector<1x1x8xf32>
    %151 = vector.shape_cast %150 : vector<1x1x8xf32> to vector<1x8xf32>
    %152 = vector.broadcast %151 : vector<1x8xf32> to vector<16x8xf32>
    %153 = arith.addf %149, %152 : vector<16x8xf32>
    %c3_114 = arith.constant 3 : index
    %c0_115 = arith.constant 0 : index
    %c0_116 = arith.constant 0 : index
    %154 = vector.load %arg16[%c3_114, %c0_115, %c0_116] : memref<4x128x8xf32, #tpu.memory_space<vmem>>, vector<1x128x8xf32>
    %155 = vector.shape_cast %154 : vector<1x128x8xf32> to vector<128x8xf32>
    %cst_117 = arith.constant dense<0.000000e+00> : vector<16x8xf32>
    %156 = tpu.matmul %68, %155, %cst_117 {dimension_numbers = #tpu.dot_dimension_numbers<[1], [0], [0], [1], [0, 0, 1, 1], [], []>} : vector<16x128xf32>, vector<128x8xf32>, vector<16x8xf32> -> vector<16x8xf32>
    %c3_118 = arith.constant 3 : index
    %c0_119 = arith.constant 0 : index
    %c0_120 = arith.constant 0 : index
    %157 = vector.load %arg17[%c3_118, %c0_119, %c0_120] : memref<4x1x8xf32, #tpu.memory_space<vmem>>, vector<1x1x8xf32>
    %158 = vector.shape_cast %157 : vector<1x1x8xf32> to vector<1x8xf32>
    %159 = vector.broadcast %158 : vector<1x8xf32> to vector<16x8xf32>
    %160 = arith.addf %156, %159 : vector<16x8xf32>
    %161 = tpu.iota {dimensions = array<i32: 1>} : vector<1x8xi32>
    %c6_i32 = arith.constant 6 : i32
    %162 = vector.broadcast %c6_i32 : i32 to vector<1x8xi32>
    %163 = arith.cmpi slt, %161, %162 : vector<1x8xi32>
    %cst_121 = arith.constant 0.000000e+00 : f32
    %cst_122 = arith.constant -1.000000e+30 : f32
    %164 = vector.broadcast %cst_121 : f32 to vector<1x8xf32>
    %165 = vector.broadcast %cst_122 : f32 to vector<1x8xf32>
    %166 = arith.select %163, %164, %165 : vector<1x8xi1>, vector<1x8xf32>
    %c0_123 = arith.constant 0 : index
    %c0_124 = arith.constant 0 : index
    %167 = vector.load %arg19[%c0_123, %c0_124] : memref<1x128xf32, #tpu.memory_space<vmem>>, vector<1x128xf32>
    %cst_125 = arith.constant 0.000000e+00 : f32
    %168 = vector.broadcast %cst_125 : f32 to vector<8x128xf32>
    %169 = vector.extract_strided_slice %77 {offsets = [0, 0], sizes = [8, 8], strides = [1, 1]} : vector<16x8xf32> to vector<8x8xf32>
    %170 = vector.extract_strided_slice %84 {offsets = [0, 0], sizes = [8, 8], strides = [1, 1]} : vector<16x8xf32> to vector<8x8xf32>
    %171 = vector.extract_strided_slice %91 {offsets = [0, 0], sizes = [8, 8], strides = [1, 1]} : vector<16x8xf32> to vector<8x8xf32>
    %cst_126 = arith.constant dense<0.000000e+00> : vector<8x8xf32>
    %172 = tpu.matmul %169, %170, %cst_126 {dimension_numbers = #tpu.dot_dimension_numbers<[1], [1], [0], [0], [0, 0, 1, 0], [], []>} : vector<8x8xf32>, vector<8x8xf32>, vector<8x8xf32> -> vector<8x8xf32>
    %173 = vector.broadcast %166 : vector<1x8xf32> to vector<8x8xf32>
    %174 = arith.addf %172, %173 : vector<8x8xf32>
    %cst_127 = arith.constant dense<0xFF800000> : vector<8xf32>
    %175 = vector.multi_reduction <maximumf>, %174, %cst_127 [1] : vector<8x8xf32> to vector<8xf32>
    %176 = vector.shape_cast %175 : vector<8xf32> to vector<8x1xf32>
    %177 = vector.broadcast %176 : vector<8x1xf32> to vector<8x8xf32>
    %178 = arith.subf %174, %177 : vector<8x8xf32>
    %179 = math.exp %178 : vector<8x8xf32>
    %cst_128 = arith.constant dense<0.000000e+00> : vector<8xf32>
    %180 = vector.multi_reduction <add>, %179, %cst_128 [1] : vector<8x8xf32> to vector<8xf32>
    %181 = vector.shape_cast %180 : vector<8xf32> to vector<8x1xf32>
    %182 = tpu.reciprocal %181 {approx = true} : vector<8x1xf32> -> vector<8x1xf32>
    %183 = vector.broadcast %182 : vector<8x1xf32> to vector<8x8xf32>
    %184 = arith.mulf %179, %183 : vector<8x8xf32>
    %cst_129 = arith.constant dense<0.000000e+00> : vector<8x8xf32>
    %185 = tpu.matmul %184, %171, %cst_129 {dimension_numbers = #tpu.dot_dimension_numbers<[1], [0], [0], [1], [0, 0, 1, 1], [], []>} : vector<8x8xf32>, vector<8x8xf32>, vector<8x8xf32> -> vector<8x8xf32>
    %c0_130 = arith.constant 0 : index
    %c0_131 = arith.constant 0 : index
    %c0_132 = arith.constant 0 : index
    %186 = vector.load %arg18[%c0_130, %c0_131, %c0_132] : memref<4x8x128xf32, #tpu.memory_space<vmem>>, vector<1x8x128xf32>
    %187 = vector.shape_cast %186 : vector<1x8x128xf32> to vector<8x128xf32>
    %cst_133 = arith.constant dense<0.000000e+00> : vector<8x128xf32>
    %188 = tpu.matmul %185, %187, %cst_133 {dimension_numbers = #tpu.dot_dimension_numbers<[1], [0], [0], [1], [0, 0, 1, 1], [], []>} : vector<8x8xf32>, vector<8x128xf32>, vector<8x128xf32> -> vector<8x128xf32>
    %189 = arith.addf %168, %188 : vector<8x128xf32>
    %190 = vector.extract_strided_slice %100 {offsets = [0, 0], sizes = [8, 8], strides = [1, 1]} : vector<16x8xf32> to vector<8x8xf32>
    %191 = vector.extract_strided_slice %107 {offsets = [0, 0], sizes = [8, 8], strides = [1, 1]} : vector<16x8xf32> to vector<8x8xf32>
    %192 = vector.extract_strided_slice %114 {offsets = [0, 0], sizes = [8, 8], strides = [1, 1]} : vector<16x8xf32> to vector<8x8xf32>
    %cst_134 = arith.constant dense<0.000000e+00> : vector<8x8xf32>
    %193 = tpu.matmul %190, %191, %cst_134 {dimension_numbers = #tpu.dot_dimension_numbers<[1], [1], [0], [0], [0, 0, 1, 0], [], []>} : vector<8x8xf32>, vector<8x8xf32>, vector<8x8xf32> -> vector<8x8xf32>
    %194 = vector.broadcast %166 : vector<1x8xf32> to vector<8x8xf32>
    %195 = arith.addf %193, %194 : vector<8x8xf32>
    %cst_135 = arith.constant dense<0xFF800000> : vector<8xf32>
    %196 = vector.multi_reduction <maximumf>, %195, %cst_135 [1] : vector<8x8xf32> to vector<8xf32>
    %197 = vector.shape_cast %196 : vector<8xf32> to vector<8x1xf32>
    %198 = vector.broadcast %197 : vector<8x1xf32> to vector<8x8xf32>
    %199 = arith.subf %195, %198 : vector<8x8xf32>
    %200 = math.exp %199 : vector<8x8xf32>
    %cst_136 = arith.constant dense<0.000000e+00> : vector<8xf32>
    %201 = vector.multi_reduction <add>, %200, %cst_136 [1] : vector<8x8xf32> to vector<8xf32>
    %202 = vector.shape_cast %201 : vector<8xf32> to vector<8x1xf32>
    %203 = tpu.reciprocal %202 {approx = true} : vector<8x1xf32> -> vector<8x1xf32>
    %204 = vector.broadcast %203 : vector<8x1xf32> to vector<8x8xf32>
    %205 = arith.mulf %200, %204 : vector<8x8xf32>
    %cst_137 = arith.constant dense<0.000000e+00> : vector<8x8xf32>
    %206 = tpu.matmul %205, %192, %cst_137 {dimension_numbers = #tpu.dot_dimension_numbers<[1], [0], [0], [1], [0, 0, 1, 1], [], []>} : vector<8x8xf32>, vector<8x8xf32>, vector<8x8xf32> -> vector<8x8xf32>
    %c1_138 = arith.constant 1 : index
    %c0_139 = arith.constant 0 : index
    %c0_140 = arith.constant 0 : index
    %207 = vector.load %arg18[%c1_138, %c0_139, %c0_140] : memref<4x8x128xf32, #tpu.memory_space<vmem>>, vector<1x8x128xf32>
    %208 = vector.shape_cast %207 : vector<1x8x128xf32> to vector<8x128xf32>
    %cst_141 = arith.constant dense<0.000000e+00> : vector<8x128xf32>
    %209 = tpu.matmul %206, %208, %cst_141 {dimension_numbers = #tpu.dot_dimension_numbers<[1], [0], [0], [1], [0, 0, 1, 1], [], []>} : vector<8x8xf32>, vector<8x128xf32>, vector<8x128xf32> -> vector<8x128xf32>
    %210 = arith.addf %189, %209 : vector<8x128xf32>
    %211 = vector.extract_strided_slice %123 {offsets = [0, 0], sizes = [8, 8], strides = [1, 1]} : vector<16x8xf32> to vector<8x8xf32>
    %212 = vector.extract_strided_slice %130 {offsets = [0, 0], sizes = [8, 8], strides = [1, 1]} : vector<16x8xf32> to vector<8x8xf32>
    %213 = vector.extract_strided_slice %137 {offsets = [0, 0], sizes = [8, 8], strides = [1, 1]} : vector<16x8xf32> to vector<8x8xf32>
    %cst_142 = arith.constant dense<0.000000e+00> : vector<8x8xf32>
    %214 = tpu.matmul %211, %212, %cst_142 {dimension_numbers = #tpu.dot_dimension_numbers<[1], [1], [0], [0], [0, 0, 1, 0], [], []>} : vector<8x8xf32>, vector<8x8xf32>, vector<8x8xf32> -> vector<8x8xf32>
    %215 = vector.broadcast %166 : vector<1x8xf32> to vector<8x8xf32>
    %216 = arith.addf %214, %215 : vector<8x8xf32>
    %cst_143 = arith.constant dense<0xFF800000> : vector<8xf32>
    %217 = vector.multi_reduction <maximumf>, %216, %cst_143 [1] : vector<8x8xf32> to vector<8xf32>
    %218 = vector.shape_cast %217 : vector<8xf32> to vector<8x1xf32>
    %219 = vector.broadcast %218 : vector<8x1xf32> to vector<8x8xf32>
    %220 = arith.subf %216, %219 : vector<8x8xf32>
    %221 = math.exp %220 : vector<8x8xf32>
    %cst_144 = arith.constant dense<0.000000e+00> : vector<8xf32>
    %222 = vector.multi_reduction <add>, %221, %cst_144 [1] : vector<8x8xf32> to vector<8xf32>
    %223 = vector.shape_cast %222 : vector<8xf32> to vector<8x1xf32>
    %224 = tpu.reciprocal %223 {approx = true} : vector<8x1xf32> -> vector<8x1xf32>
    %225 = vector.broadcast %224 : vector<8x1xf32> to vector<8x8xf32>
    %226 = arith.mulf %221, %225 : vector<8x8xf32>
    %cst_145 = arith.constant dense<0.000000e+00> : vector<8x8xf32>
    %227 = tpu.matmul %226, %213, %cst_145 {dimension_numbers = #tpu.dot_dimension_numbers<[1], [0], [0], [1], [0, 0, 1, 1], [], []>} : vector<8x8xf32>, vector<8x8xf32>, vector<8x8xf32> -> vector<8x8xf32>
    %c2_146 = arith.constant 2 : index
    %c0_147 = arith.constant 0 : index
    %c0_148 = arith.constant 0 : index
    %228 = vector.load %arg18[%c2_146, %c0_147, %c0_148] : memref<4x8x128xf32, #tpu.memory_space<vmem>>, vector<1x8x128xf32>
    %229 = vector.shape_cast %228 : vector<1x8x128xf32> to vector<8x128xf32>
    %cst_149 = arith.constant dense<0.000000e+00> : vector<8x128xf32>
    %230 = tpu.matmul %227, %229, %cst_149 {dimension_numbers = #tpu.dot_dimension_numbers<[1], [0], [0], [1], [0, 0, 1, 1], [], []>} : vector<8x8xf32>, vector<8x128xf32>, vector<8x128xf32> -> vector<8x128xf32>
    %231 = arith.addf %210, %230 : vector<8x128xf32>
    %232 = vector.extract_strided_slice %146 {offsets = [0, 0], sizes = [8, 8], strides = [1, 1]} : vector<16x8xf32> to vector<8x8xf32>
    %233 = vector.extract_strided_slice %153 {offsets = [0, 0], sizes = [8, 8], strides = [1, 1]} : vector<16x8xf32> to vector<8x8xf32>
    %234 = vector.extract_strided_slice %160 {offsets = [0, 0], sizes = [8, 8], strides = [1, 1]} : vector<16x8xf32> to vector<8x8xf32>
    %cst_150 = arith.constant dense<0.000000e+00> : vector<8x8xf32>
    %235 = tpu.matmul %232, %233, %cst_150 {dimension_numbers = #tpu.dot_dimension_numbers<[1], [1], [0], [0], [0, 0, 1, 0], [], []>} : vector<8x8xf32>, vector<8x8xf32>, vector<8x8xf32> -> vector<8x8xf32>
    %236 = vector.broadcast %166 : vector<1x8xf32> to vector<8x8xf32>
    %237 = arith.addf %235, %236 : vector<8x8xf32>
    %cst_151 = arith.constant dense<0xFF800000> : vector<8xf32>
    %238 = vector.multi_reduction <maximumf>, %237, %cst_151 [1] : vector<8x8xf32> to vector<8xf32>
    %239 = vector.shape_cast %238 : vector<8xf32> to vector<8x1xf32>
    %240 = vector.broadcast %239 : vector<8x1xf32> to vector<8x8xf32>
    %241 = arith.subf %237, %240 : vector<8x8xf32>
    %242 = math.exp %241 : vector<8x8xf32>
    %cst_152 = arith.constant dense<0.000000e+00> : vector<8xf32>
    %243 = vector.multi_reduction <add>, %242, %cst_152 [1] : vector<8x8xf32> to vector<8xf32>
    %244 = vector.shape_cast %243 : vector<8xf32> to vector<8x1xf32>
    %245 = tpu.reciprocal %244 {approx = true} : vector<8x1xf32> -> vector<8x1xf32>
    %246 = vector.broadcast %245 : vector<8x1xf32> to vector<8x8xf32>
    %247 = arith.mulf %242, %246 : vector<8x8xf32>
    %cst_153 = arith.constant dense<0.000000e+00> : vector<8x8xf32>
    %248 = tpu.matmul %247, %234, %cst_153 {dimension_numbers = #tpu.dot_dimension_numbers<[1], [0], [0], [1], [0, 0, 1, 1], [], []>} : vector<8x8xf32>, vector<8x8xf32>, vector<8x8xf32> -> vector<8x8xf32>
    %c3_154 = arith.constant 3 : index
    %c0_155 = arith.constant 0 : index
    %c0_156 = arith.constant 0 : index
    %249 = vector.load %arg18[%c3_154, %c0_155, %c0_156] : memref<4x8x128xf32, #tpu.memory_space<vmem>>, vector<1x8x128xf32>
    %250 = vector.shape_cast %249 : vector<1x8x128xf32> to vector<8x128xf32>
    %cst_157 = arith.constant dense<0.000000e+00> : vector<8x128xf32>
    %251 = tpu.matmul %248, %250, %cst_157 {dimension_numbers = #tpu.dot_dimension_numbers<[1], [0], [0], [1], [0, 0, 1, 1], [], []>} : vector<8x8xf32>, vector<8x128xf32>, vector<8x128xf32> -> vector<8x128xf32>
    %252 = arith.addf %231, %251 : vector<8x128xf32>
    %253 = vector.broadcast %167 : vector<1x128xf32> to vector<8x128xf32>
    %254 = arith.addf %252, %253 : vector<8x128xf32>
    %c0_158 = arith.constant 0 : index
    %c0_159 = arith.constant 0 : index
    %255 = vector.load %arg27[%c0_158, %c0_159] : memref<16x128xf32, #tpu.memory_space<vmem>>, vector<8x128xf32>
    tpu.vector_store %arg27[%c0_158, %c0_159], %254 {strides = array<i32>} : memref<16x128xf32, #tpu.memory_space<vmem>>, vector<8x128xf32>,
    %cst_160 = arith.constant 0.000000e+00 : f32
    %256 = vector.broadcast %cst_160 : f32 to vector<8x128xf32>
    %257 = vector.extract_strided_slice %77 {offsets = [8, 0], sizes = [8, 8], strides = [1, 1]} : vector<16x8xf32> to vector<8x8xf32>
    %258 = vector.extract_strided_slice %84 {offsets = [8, 0], sizes = [8, 8], strides = [1, 1]} : vector<16x8xf32> to vector<8x8xf32>
    %259 = vector.extract_strided_slice %91 {offsets = [8, 0], sizes = [8, 8], strides = [1, 1]} : vector<16x8xf32> to vector<8x8xf32>
    %cst_161 = arith.constant dense<0.000000e+00> : vector<8x8xf32>
    %260 = tpu.matmul %257, %258, %cst_161 {dimension_numbers = #tpu.dot_dimension_numbers<[1], [1], [0], [0], [0, 0, 1, 0], [], []>} : vector<8x8xf32>, vector<8x8xf32>, vector<8x8xf32> -> vector<8x8xf32>
    %261 = vector.broadcast %166 : vector<1x8xf32> to vector<8x8xf32>
    %262 = arith.addf %260, %261 : vector<8x8xf32>
    %cst_162 = arith.constant dense<0xFF800000> : vector<8xf32>
    %263 = vector.multi_reduction <maximumf>, %262, %cst_162 [1] : vector<8x8xf32> to vector<8xf32>
    %264 = vector.shape_cast %263 : vector<8xf32> to vector<8x1xf32>
    %265 = vector.broadcast %264 : vector<8x1xf32> to vector<8x8xf32>
    %266 = arith.subf %262, %265 : vector<8x8xf32>
    %267 = math.exp %266 : vector<8x8xf32>
    %cst_163 = arith.constant dense<0.000000e+00> : vector<8xf32>
    %268 = vector.multi_reduction <add>, %267, %cst_163 [1] : vector<8x8xf32> to vector<8xf32>
    %269 = vector.shape_cast %268 : vector<8xf32> to vector<8x1xf32>
    %270 = tpu.reciprocal %269 {approx = true} : vector<8x1xf32> -> vector<8x1xf32>
    %271 = vector.broadcast %270 : vector<8x1xf32> to vector<8x8xf32>
    %272 = arith.mulf %267, %271 : vector<8x8xf32>
    %cst_164 = arith.constant dense<0.000000e+00> : vector<8x8xf32>
    %273 = tpu.matmul %272, %259, %cst_164 {dimension_numbers = #tpu.dot_dimension_numbers<[1], [0], [0], [1], [0, 0, 1, 1], [], []>} : vector<8x8xf32>, vector<8x8xf32>, vector<8x8xf32> -> vector<8x8xf32>
    %c0_165 = arith.constant 0 : index
    %c0_166 = arith.constant 0 : index
    %c0_167 = arith.constant 0 : index
    %274 = vector.load %arg18[%c0_165, %c0_166, %c0_167] : memref<4x8x128xf32, #tpu.memory_space<vmem>>, vector<1x8x128xf32>
    %275 = vector.shape_cast %274 : vector<1x8x128xf32> to vector<8x128xf32>
    %cst_168 = arith.constant dense<0.000000e+00> : vector<8x128xf32>
    %276 = tpu.matmul %273, %275, %cst_168 {dimension_numbers = #tpu.dot_dimension_numbers<[1], [0], [0], [1], [0, 0, 1, 1], [], []>} : vector<8x8xf32>, vector<8x128xf32>, vector<8x128xf32> -> vector<8x128xf32>
    %277 = arith.addf %256, %276 : vector<8x128xf32>
    %278 = vector.extract_strided_slice %100 {offsets = [8, 0], sizes = [8, 8], strides = [1, 1]} : vector<16x8xf32> to vector<8x8xf32>
    %279 = vector.extract_strided_slice %107 {offsets = [8, 0], sizes = [8, 8], strides = [1, 1]} : vector<16x8xf32> to vector<8x8xf32>
    %280 = vector.extract_strided_slice %114 {offsets = [8, 0], sizes = [8, 8], strides = [1, 1]} : vector<16x8xf32> to vector<8x8xf32>
    %cst_169 = arith.constant dense<0.000000e+00> : vector<8x8xf32>
    %281 = tpu.matmul %278, %279, %cst_169 {dimension_numbers = #tpu.dot_dimension_numbers<[1], [1], [0], [0], [0, 0, 1, 0], [], []>} : vector<8x8xf32>, vector<8x8xf32>, vector<8x8xf32> -> vector<8x8xf32>
    %282 = vector.broadcast %166 : vector<1x8xf32> to vector<8x8xf32>
    %283 = arith.addf %281, %282 : vector<8x8xf32>
    %cst_170 = arith.constant dense<0xFF800000> : vector<8xf32>
    %284 = vector.multi_reduction <maximumf>, %283, %cst_170 [1] : vector<8x8xf32> to vector<8xf32>
    %285 = vector.shape_cast %284 : vector<8xf32> to vector<8x1xf32>
    %286 = vector.broadcast %285 : vector<8x1xf32> to vector<8x8xf32>
    %287 = arith.subf %283, %286 : vector<8x8xf32>
    %288 = math.exp %287 : vector<8x8xf32>
    %cst_171 = arith.constant dense<0.000000e+00> : vector<8xf32>
    %289 = vector.multi_reduction <add>, %288, %cst_171 [1] : vector<8x8xf32> to vector<8xf32>
    %290 = vector.shape_cast %289 : vector<8xf32> to vector<8x1xf32>
    %291 = tpu.reciprocal %290 {approx = true} : vector<8x1xf32> -> vector<8x1xf32>
    %292 = vector.broadcast %291 : vector<8x1xf32> to vector<8x8xf32>
    %293 = arith.mulf %288, %292 : vector<8x8xf32>
    %cst_172 = arith.constant dense<0.000000e+00> : vector<8x8xf32>
    %294 = tpu.matmul %293, %280, %cst_172 {dimension_numbers = #tpu.dot_dimension_numbers<[1], [0], [0], [1], [0, 0, 1, 1], [], []>} : vector<8x8xf32>, vector<8x8xf32>, vector<8x8xf32> -> vector<8x8xf32>
    %c1_173 = arith.constant 1 : index
    %c0_174 = arith.constant 0 : index
    %c0_175 = arith.constant 0 : index
    %295 = vector.load %arg18[%c1_173, %c0_174, %c0_175] : memref<4x8x128xf32, #tpu.memory_space<vmem>>, vector<1x8x128xf32>
    %296 = vector.shape_cast %295 : vector<1x8x128xf32> to vector<8x128xf32>
    %cst_176 = arith.constant dense<0.000000e+00> : vector<8x128xf32>
    %297 = tpu.matmul %294, %296, %cst_176 {dimension_numbers = #tpu.dot_dimension_numbers<[1], [0], [0], [1], [0, 0, 1, 1], [], []>} : vector<8x8xf32>, vector<8x128xf32>, vector<8x128xf32> -> vector<8x128xf32>
    %298 = arith.addf %277, %297 : vector<8x128xf32>
    %299 = vector.extract_strided_slice %123 {offsets = [8, 0], sizes = [8, 8], strides = [1, 1]} : vector<16x8xf32> to vector<8x8xf32>
    %300 = vector.extract_strided_slice %130 {offsets = [8, 0], sizes = [8, 8], strides = [1, 1]} : vector<16x8xf32> to vector<8x8xf32>
    %301 = vector.extract_strided_slice %137 {offsets = [8, 0], sizes = [8, 8], strides = [1, 1]} : vector<16x8xf32> to vector<8x8xf32>
    %cst_177 = arith.constant dense<0.000000e+00> : vector<8x8xf32>
    %302 = tpu.matmul %299, %300, %cst_177 {dimension_numbers = #tpu.dot_dimension_numbers<[1], [1], [0], [0], [0, 0, 1, 0], [], []>} : vector<8x8xf32>, vector<8x8xf32>, vector<8x8xf32> -> vector<8x8xf32>
    %303 = vector.broadcast %166 : vector<1x8xf32> to vector<8x8xf32>
    %304 = arith.addf %302, %303 : vector<8x8xf32>
    %cst_178 = arith.constant dense<0xFF800000> : vector<8xf32>
    %305 = vector.multi_reduction <maximumf>, %304, %cst_178 [1] : vector<8x8xf32> to vector<8xf32>
    %306 = vector.shape_cast %305 : vector<8xf32> to vector<8x1xf32>
    %307 = vector.broadcast %306 : vector<8x1xf32> to vector<8x8xf32>
    %308 = arith.subf %304, %307 : vector<8x8xf32>
    %309 = math.exp %308 : vector<8x8xf32>
    %cst_179 = arith.constant dense<0.000000e+00> : vector<8xf32>
    %310 = vector.multi_reduction <add>, %309, %cst_179 [1] : vector<8x8xf32> to vector<8xf32>
    %311 = vector.shape_cast %310 : vector<8xf32> to vector<8x1xf32>
    %312 = tpu.reciprocal %311 {approx = true} : vector<8x1xf32> -> vector<8x1xf32>
    %313 = vector.broadcast %312 : vector<8x1xf32> to vector<8x8xf32>
    %314 = arith.mulf %309, %313 : vector<8x8xf32>
    %cst_180 = arith.constant dense<0.000000e+00> : vector<8x8xf32>
    %315 = tpu.matmul %314, %301, %cst_180 {dimension_numbers = #tpu.dot_dimension_numbers<[1], [0], [0], [1], [0, 0, 1, 1], [], []>} : vector<8x8xf32>, vector<8x8xf32>, vector<8x8xf32> -> vector<8x8xf32>
    %c2_181 = arith.constant 2 : index
    %c0_182 = arith.constant 0 : index
    %c0_183 = arith.constant 0 : index
    %316 = vector.load %arg18[%c2_181, %c0_182, %c0_183] : memref<4x8x128xf32, #tpu.memory_space<vmem>>, vector<1x8x128xf32>
    %317 = vector.shape_cast %316 : vector<1x8x128xf32> to vector<8x128xf32>
    %cst_184 = arith.constant dense<0.000000e+00> : vector<8x128xf32>
    %318 = tpu.matmul %315, %317, %cst_184 {dimension_numbers = #tpu.dot_dimension_numbers<[1], [0], [0], [1], [0, 0, 1, 1], [], []>} : vector<8x8xf32>, vector<8x128xf32>, vector<8x128xf32> -> vector<8x128xf32>
    %319 = arith.addf %298, %318 : vector<8x128xf32>
    %320 = vector.extract_strided_slice %146 {offsets = [8, 0], sizes = [8, 8], strides = [1, 1]} : vector<16x8xf32> to vector<8x8xf32>
    %321 = vector.extract_strided_slice %153 {offsets = [8, 0], sizes = [8, 8], strides = [1, 1]} : vector<16x8xf32> to vector<8x8xf32>
    %322 = vector.extract_strided_slice %160 {offsets = [8, 0], sizes = [8, 8], strides = [1, 1]} : vector<16x8xf32> to vector<8x8xf32>
    %cst_185 = arith.constant dense<0.000000e+00> : vector<8x8xf32>
    %323 = tpu.matmul %320, %321, %cst_185 {dimension_numbers = #tpu.dot_dimension_numbers<[1], [1], [0], [0], [0, 0, 1, 0], [], []>} : vector<8x8xf32>, vector<8x8xf32>, vector<8x8xf32> -> vector<8x8xf32>
    %324 = vector.broadcast %166 : vector<1x8xf32> to vector<8x8xf32>
    %325 = arith.addf %323, %324 : vector<8x8xf32>
    %cst_186 = arith.constant dense<0xFF800000> : vector<8xf32>
    %326 = vector.multi_reduction <maximumf>, %325, %cst_186 [1] : vector<8x8xf32> to vector<8xf32>
    %327 = vector.shape_cast %326 : vector<8xf32> to vector<8x1xf32>
    %328 = vector.broadcast %327 : vector<8x1xf32> to vector<8x8xf32>
    %329 = arith.subf %325, %328 : vector<8x8xf32>
    %330 = math.exp %329 : vector<8x8xf32>
    %cst_187 = arith.constant dense<0.000000e+00> : vector<8xf32>
    %331 = vector.multi_reduction <add>, %330, %cst_187 [1] : vector<8x8xf32> to vector<8xf32>
    %332 = vector.shape_cast %331 : vector<8xf32> to vector<8x1xf32>
    %333 = tpu.reciprocal %332 {approx = true} : vector<8x1xf32> -> vector<8x1xf32>
    %334 = vector.broadcast %333 : vector<8x1xf32> to vector<8x8xf32>
    %335 = arith.mulf %330, %334 : vector<8x8xf32>
    %cst_188 = arith.constant dense<0.000000e+00> : vector<8x8xf32>
    %336 = tpu.matmul %335, %322, %cst_188 {dimension_numbers = #tpu.dot_dimension_numbers<[1], [0], [0], [1], [0, 0, 1, 1], [], []>} : vector<8x8xf32>, vector<8x8xf32>, vector<8x8xf32> -> vector<8x8xf32>
    %c3_189 = arith.constant 3 : index
    %c0_190 = arith.constant 0 : index
    %c0_191 = arith.constant 0 : index
    %337 = vector.load %arg18[%c3_189, %c0_190, %c0_191] : memref<4x8x128xf32, #tpu.memory_space<vmem>>, vector<1x8x128xf32>
    %338 = vector.shape_cast %337 : vector<1x8x128xf32> to vector<8x128xf32>
    %cst_192 = arith.constant dense<0.000000e+00> : vector<8x128xf32>
    %339 = tpu.matmul %336, %338, %cst_192 {dimension_numbers = #tpu.dot_dimension_numbers<[1], [0], [0], [1], [0, 0, 1, 1], [], []>} : vector<8x8xf32>, vector<8x128xf32>, vector<8x128xf32> -> vector<8x128xf32>
    %340 = arith.addf %319, %339 : vector<8x128xf32>
    %341 = vector.broadcast %167 : vector<1x128xf32> to vector<8x128xf32>
    %342 = arith.addf %340, %341 : vector<8x128xf32>
    %c8 = arith.constant 8 : index
    %c0_193 = arith.constant 0 : index
    %343 = vector.load %arg27[%c8, %c0_193] : memref<16x128xf32, #tpu.memory_space<vmem>>, vector<8x128xf32>
    tpu.vector_store %arg27[%c8, %c0_193], %342 {strides = array<i32>} : memref<16x128xf32, #tpu.memory_space<vmem>>, vector<8x128xf32>,
    %c0_194 = arith.constant 0 : index
    %c0_195 = arith.constant 0 : index
    %344 = vector.load %arg3[%c0_194, %c0_195] : memref<8x16xf32, #tpu.memory_space<vmem>>, vector<8x16xf32>
    %c0_196 = arith.constant 0 : index
    %c0_197 = arith.constant 0 : index
    %345 = vector.load %arg27[%c0_196, %c0_197] : memref<16x128xf32, #tpu.memory_space<vmem>>, vector<16x128xf32>
    %cst_198 = arith.constant dense<0.000000e+00> : vector<8x128xf32>
    %346 = tpu.matmul %344, %345, %cst_198 {dimension_numbers = #tpu.dot_dimension_numbers<[1], [0], [0], [1], [0, 0, 1, 1], [], []>} : vector<8x16xf32>, vector<16x128xf32>, vector<8x128xf32> -> vector<8x128xf32>
    %c0_199 = arith.constant 0 : index
    %c0_200 = arith.constant 0 : index
    %347 = vector.load %arg20[%c0_199, %c0_200] : memref<1x128xf32, #tpu.memory_space<vmem>>, vector<1x128xf32>
    %c0_201 = arith.constant 0 : index
    %c0_202 = arith.constant 0 : index
    %348 = vector.load %arg21[%c0_201, %c0_202] : memref<1x128xf32, #tpu.memory_space<vmem>>, vector<1x128xf32>
    %c0_203 = arith.constant 0 : index
    %c0_204 = arith.constant 0 : index
    %349 = vector.load %arg22[%c0_203, %c0_204] : memref<128x128xf32, #tpu.memory_space<vmem>>, vector<128x128xf32>
    %c0_205 = arith.constant 0 : index
    %c0_206 = arith.constant 0 : index
    %350 = vector.load %arg23[%c0_205, %c0_206] : memref<1x128xf32, #tpu.memory_space<vmem>>, vector<1x128xf32>
    %c0_207 = arith.constant 0 : index
    %c0_208 = arith.constant 0 : index
    %351 = vector.load %arg24[%c0_207, %c0_208] : memref<128x128xf32, #tpu.memory_space<vmem>>, vector<128x128xf32>
    %c0_209 = arith.constant 0 : index
    %c0_210 = arith.constant 0 : index
    %352 = vector.load %arg25[%c0_209, %c0_210] : memref<1x128xf32, #tpu.memory_space<vmem>>, vector<1x128xf32>
    %cst_211 = arith.constant dense<0.000000e+00> : vector<128xf32>
    %353 = vector.multi_reduction <add>, %346, %cst_211 [0] : vector<8x128xf32> to vector<128xf32>
    %354 = vector.shape_cast %353 : vector<128xf32> to vector<1x128xf32>
    %cst_212 = arith.constant 1.250000e-01 : f32
    %355 = vector.broadcast %cst_212 : f32 to vector<1x128xf32>
    %356 = arith.mulf %354, %355 : vector<1x128xf32>
    %357 = arith.mulf %346, %346 : vector<8x128xf32>
    %cst_213 = arith.constant dense<0.000000e+00> : vector<128xf32>
    %358 = vector.multi_reduction <add>, %357, %cst_213 [0] : vector<8x128xf32> to vector<128xf32>
    %359 = vector.shape_cast %358 : vector<128xf32> to vector<1x128xf32>
    %cst_214 = arith.constant 1.250000e-01 : f32
    %360 = vector.broadcast %cst_214 : f32 to vector<1x128xf32>
    %361 = arith.mulf %359, %360 : vector<1x128xf32>
    %362 = arith.mulf %356, %356 : vector<1x128xf32>
    %363 = arith.subf %361, %362 : vector<1x128xf32>
    %cst_215 = arith.constant 0.000000e+00 : f32
    %364 = vector.broadcast %cst_215 : f32 to vector<1x128xf32>
    %365 = arith.maximumf %363, %364 : vector<1x128xf32>
    %366 = vector.broadcast %356 : vector<1x128xf32> to vector<8x128xf32>
    %367 = arith.subf %346, %366 : vector<8x128xf32>
    %cst_216 = arith.constant 9.99999974E-6 : f32
    %368 = vector.broadcast %cst_216 : f32 to vector<1x128xf32>
    %369 = arith.addf %365, %368 : vector<1x128xf32>
    %370 = math.rsqrt %369 : vector<1x128xf32>
    %371 = vector.broadcast %370 : vector<1x128xf32> to vector<8x128xf32>
    %372 = arith.mulf %367, %371 : vector<8x128xf32>
    %373 = vector.broadcast %347 : vector<1x128xf32> to vector<8x128xf32>
    %374 = arith.mulf %372, %373 : vector<8x128xf32>
    %375 = vector.broadcast %348 : vector<1x128xf32> to vector<8x128xf32>
    %376 = arith.addf %374, %375 : vector<8x128xf32>
    %cst_217 = arith.constant dense<0.000000e+00> : vector<8x128xf32>
    %377 = tpu.matmul %376, %349, %cst_217 {dimension_numbers = #tpu.dot_dimension_numbers<[1], [0], [0], [1], [0, 0, 1, 1], [], []>} : vector<8x128xf32>, vector<128x128xf32>, vector<8x128xf32> -> vector<8x128xf32>
    %378 = vector.broadcast %350 : vector<1x128xf32> to vector<8x128xf32>
    %379 = arith.addf %377, %378 : vector<8x128xf32>
    %cst_218 = arith.constant 0.000000e+00 : f32
    %380 = vector.broadcast %cst_218 : f32 to vector<8x128xf32>
    %381 = arith.maximumf %379, %380 : vector<8x128xf32>
    %cst_219 = arith.constant dense<0.000000e+00> : vector<8x128xf32>
    %382 = tpu.matmul %381, %351, %cst_219 {dimension_numbers = #tpu.dot_dimension_numbers<[1], [0], [0], [1], [0, 0, 1, 1], [], []>} : vector<8x128xf32>, vector<128x128xf32>, vector<8x128xf32> -> vector<8x128xf32>
    %383 = arith.addf %346, %382 : vector<8x128xf32>
    %384 = vector.broadcast %352 : vector<1x128xf32> to vector<8x128xf32>
    %385 = arith.addf %383, %384 : vector<8x128xf32>
    %c0_220 = arith.constant 0 : index
    %c0_221 = arith.constant 0 : index
    %386 = vector.load %arg26[%c0_220, %c0_221] : memref<8x128xf32, #tpu.memory_space<vmem>>, vector<8x128xf32>
    tpu.vector_store %arg26[%c0_220, %c0_221], %385 {strides = array<i32>} : memref<8x128xf32, #tpu.memory_space<vmem>>, vector<8x128xf32>,
    return
  }
}

</mosaic_0001>

<bundles_post_ra>
// kernel: tpu_custom_call.1
= control target key start
LH: loop header
LB: loop body
LE: loop exit
PB: predicated region body
PF: predicated region fallthrough
CT: control target
= control target key end

     0   :  { %s7008_s0 = inlined_call_operand.vmem [shape: f32[8,128], index: 0, kind: input, shape index: {}]   ;;  %s7009_s1 = inlined_call_operand.vmem [shape: f32[16,128], index: 1, kind: input, shape index: {}]   ;;  %s7010_s2 = inlined_call_operand.vmem [shape: f32[16,8], index: 2, kind: input, shape index: {}]   ;;  %s7011_s3 = inlined_call_operand.vmem [shape: f32[8,16], index: 3, kind: input, shape index: {}]   ;;  %s7012_s4 = inlined_call_operand.vmem [shape: f32[1,128], index: 4, kind: input, shape index: {}]   ;;  %s7013_s5 = inlined_call_operand.vmem [shape: f32[1,128], index: 5, kind: input, shape index: {}]   ;;  %s7014_s6 = inlined_call_operand.vmem [shape: f32[128,128], index: 6, kind: input, shape index: {}]   ;;  %s7015_s7 = inlined_call_operand.vmem [shape: f32[1,128], index: 7, kind: input, shape index: {}]   ;;  %s7016_s8 = inlined_call_operand.vmem [shape: f32[128,128], index: 8, kind: input, shape index: {}]   ;;  %s7017_s9 = inlined_call_operand.vmem [shape: f32[1,128], index: 9, kind: input, shape index: {}]   ;;  %s7018_s10 = inlined_call_operand.vmem [shape: f32[1,128], index: 10, kind: input, shape index: {}]   ;;  %s7019_s11 = inlined_call_operand.vmem [shape: f32[1,128], index: 11, kind: input, shape index: {}]   ;;  %s7020_s12 = inlined_call_operand.vmem [shape: f32[4,128,8], index: 12, kind: input, shape index: {}]   ;;  %s7021_s13 = inlined_call_operand.vmem [shape: f32[4,1,8], index: 13, kind: input, shape index: {}]   ;;  %s7022_s14 = inlined_call_operand.vmem [shape: f32[4,128,8], index: 14, kind: input, shape index: {}]   ;;  %s7023_s15 = inlined_call_operand.vmem [shape: f32[4,1,8], index: 15, kind: input, shape index: {}]   ;;  %s7024_s16 = inlined_call_operand.vmem [shape: f32[4,128,8], index: 16, kind: input, shape index: {}]   ;;  %s7025_s17 = inlined_call_operand.vmem [shape: f32[4,1,8], index: 17, kind: input, shape index: {}]   ;;  %s7026_s18 = inlined_call_operand.vmem [shape: f32[4,8,128], index: 18, kind: input, shape index: {}]   ;;  %s7027_s19 = inlined_call_operand.vmem [shape: f32[1,128], index: 19, kind: input, shape index: {}]   ;;  %s7028_s20 = inlined_call_operand.vmem [shape: f32[1,128], index: 20, kind: input, shape index: {}]   ;;  %s7029_s21 = inlined_call_operand.vmem [shape: f32[1,128], index: 21, kind: input, shape index: {}]   ;;  %s7030_s22 = inlined_call_operand.vmem [shape: f32[128,128], index: 22, kind: input, shape index: {}]   ;;  %s7031_s23 = inlined_call_operand.vmem [shape: f32[1,128], index: 23, kind: input, shape index: {}]   ;;  %s7032_s24 = inlined_call_operand.vmem [shape: f32[128,128], index: 24, kind: input, shape index: {}]   ;;  %s7033_s25 = inlined_call_operand.vmem [shape: f32[1,128], index: 25, kind: input, shape index: {}]   ;;  %s7034_s26 = inlined_call_operand.hbm [shape: f32[8,128], index: 26, kind: output, shape index: {}]  }
   0x1   :  { %7039 = sst [smem:[#allocation6_spill]] %s7008_s0 }
   0x2   :  { %7040 = sst [smem:[#allocation7_spill]] %s7009_s1 }
   0x3   :  { %7041 = sst [smem:[#allocation8_spill]] %s7010_s2 }
   0x4   :  { %7042 = sst [smem:[#allocation9_spill]] %s7011_s3 }
   0x5   :  { %7043 = sst [smem:[#allocation10_spill]] %s7012_s4 }
   0x6   :  { %7044 = sst [smem:[#allocation11_spill]] %s7013_s5 }
   0x7   :  { %7045 = sst [smem:[#allocation12_spill]] %s7014_s6 }
   0x8   :  { %7046 = sst [smem:[#allocation13_spill]] %s7015_s7 }
   0x9   :  { %7047 = sst [smem:[#allocation14_spill]] %s7016_s8 }
   0xa   :  { %7048 = sst [smem:[#allocation15_spill]] %s7017_s9 }
   0xb   :  { %7049 = sst [smem:[#allocation16_spill]] %s7018_s10 }
   0xc   :  { %s7050_s7 = sld [smem:[#allocation12_spill]]  ;;  %v5658_v3 = vmov 0.0|0.0   ;;  %vm5659_vm0 = vmmov 0   ;;  %v5660_v6 = vmov 0.0   ;;  %s7051_s27 = sld [smem:[#allocation6_spill]] }
   0xd   :  { %5106 = vmatprep.subr.bf16.mxu0 %v5658_v3  ;;  %4446 = vmatprep.mubr.msk.f32.mxu0 %vm5659_vm0, %v5660_v6  ;;  %s7052_s8 = sld [smem:[#allocation14_spill]] }
   0xe   :  { %5130 = vmatprep.subr.bf16.mxu1 %v5658_v3  ;;  %4481 = vmatprep.mubr.msk.f32.mxu1 %vm5659_vm0, %v5660_v6 }
  0x12   :  { %v87_v0 = vld [vmem:[%s7050_s7] sm:$0xff]  ;;  %v88_v1 = vld [vmem:[%s7050_s7 + $0x8] sm:$0xff]  ;;  %v89_v2 = vld [vmem:[%s7050_s7 + $0x10] sm:$0xff] }
  0x13   :  { %v5107_v4 = vpack.c.bf16 %v88_v1, %v87_v0  ;;  %v90_v5 = vld [vmem:[%s7050_s7 + $0x18] sm:$0xff]  ;;  %v91_v8 = vld [vmem:[%s7050_s7 + $0x20] sm:$0xff]  ;;  %v92_v9 = vld [vmem:[%s7050_s7 + $0x28] sm:$0xff] }
  0x14   :  { %v5110_v7 = vpack.c.bf16 %v90_v5, %v89_v2  ;;  %v5826_v10 = vld [vmem:[%s7051_s27] sm:$0xff]  ;;  %v105_v14 = vld [vmem:[%s7052_s8 + $0x8] sm:$0xff]  ;;  %v5113_v15 = vpack.c.bf16 %v92_v9, %v91_v8  ;;  %v106_v17 = vld [vmem:[%s7052_s8 + $0x10] sm:$0xff] }
  0x15   :  { %5108 = vmatpush3.bf16.msra.mxu0 %v5107_v4  ;;  %v121_v11 = vrot.slane %v5826_v10, 4  ;;  %v128_v12 = vmul.f32 %v5826_v10, %v5826_v10  ;;  %v104_v13 = vld [vmem:[%s7052_s8] sm:$0xff]  ;;  %v107_v18 = vld [vmem:[%s7052_s8 + $0x18] sm:$0xff]  ;;  %v93_v19 = vld [vmem:[%s7050_s7 + $0x30] sm:$0xff] }
  0x16   :  { %5109 = vmatprep.subr.bf16.mxu0 %v5658_v3  ;;  %v5131_v16 = vpack.c.bf16 %v105_v14, %v104_v13  ;;  %v94_v20 = vld [vmem:[%s7050_s7 + $0x38] sm:$0xff]  ;;  %v5134_v23 = vpack.c.bf16 %v107_v18, %v106_v17  ;;  %v108_v26 = vld [vmem:[%s7052_s8 + $0x20] sm:$0xff]  ;;  %v109_v27 = vld [vmem:[%s7052_s8 + $0x28] sm:$0xff] }
  0x17   :  { %v122_v21 = vadd.f32 %v121_v11, %v5826_v10  ;;  %v129_v22 = vrot.slane %v128_v12, 4  ;;  %v5116_v28 = vpack.c.bf16 %v94_v20, %v93_v19 }
  0x18   :  { %5132 = vmatpush3.bf16.msra.mxu1 %v5131_v16 }
  0x19   :  { %5111 = vmatpush3.bf16.msra.mxu0 %v5110_v7  ;;  %v123_v24 = vrot.slane %v122_v21, 2  ;;  %v130_v25 = vadd.f32 %v129_v22, %v128_v12  ;;  %5133 = vmatprep.subr.bf16.mxu1 %v5658_v3 }
  0x1a   :  { %5112 = vmatprep.subr.bf16.mxu0 %v5658_v3 }
  0x1d   :  { %5114 = vmatpush3.bf16.msra.mxu0 %v5113_v15 }
  0x1e   :  { %31 = vsyncpa [#allocation4], 0  ;;  %5115 = vmatprep.subr.bf16.mxu0 %v5658_v3  ;;  %v95_v29 = vld [vmem:[%s7050_s7 + $0x40] sm:$0xff]  ;;  %v96_v30 = vld [vmem:[%s7050_s7 + $0x48] sm:$0xff]  ;;  %v124_v31 = vadd.f32 %v123_v24, %v122_v21  ;;  %v131_v32 = vrot.slane %v130_v25, 2  ;;  %5135 = vmatpush3.bf16.msra.mxu1 %v5134_v23  ;;  %v5137_v33 = vpack.c.bf16 %v109_v27, %v108_v26  ;;  %s7053_s6 = sld [smem:[#allocation10_spill]] }
  0x1f   :  { %5136 = vmatprep.subr.bf16.mxu1 %v5658_v3  ;;  %v110_v36 = vld [vmem:[%s7052_s8 + $0x30] sm:$0xff]  ;;  %v111_v37 = vld [vmem:[%s7052_s8 + $0x38] sm:$0xff]  ;;  %v5119_v38 = vpack.c.bf16 %v96_v30, %v95_v29  ;;  %v112_v46 = vld [vmem:[%s7052_s8 + $0x40] sm:$0xff]  ;;  %s7054_s3 = sld [smem:[#allocation11_spill]]  ;;  %s7055_s2 = sld [smem:[#allocation13_spill]]  ;;  %vm314_vm1 = vcmask 64512  }
  0x20   :  { %v125_v34 = vrot.slane %v124_v31, 1  ;;  %v132_v35 = vadd.f32 %v131_v32, %v130_v25  ;;  %v97_v39 = vld [vmem:[%s7050_s7 + $0x50] sm:$0xff]  ;;  %v98_v40 = vld [vmem:[%s7050_s7 + $0x58] sm:$0xff]  ;;  %v5140_v43 = vpack.c.bf16 %v111_v37, %v110_v36  ;;  %v113_v47 = vld [vmem:[%s7052_s8 + $0x48] sm:$0xff]  ;;  %s7056_s10 = sld [smem:[#allocation8_spill]]  ;;  %s7057_s1 = sld [smem:[#allocation15_spill]] }
  0x21   :  { %5117 = vmatpush3.bf16.msra.mxu0 %v5116_v28  ;;  %v5122_v48 = vpack.c.bf16 %v98_v40, %v97_v39  ;;  %v99_v49 = vld [vmem:[%s7050_s7 + $0x60] sm:$0xff]  ;;  %v100_v50 = vld [vmem:[%s7050_s7 + $0x68] sm:$0xff]  ;;  %v5143_v53 = vpack.c.bf16 %v113_v47, %v112_v46  ;;  %v114_v55 = vld [vmem:[%s7052_s8 + $0x50] sm:$0xff]  ;;  %s7058_s5 = sld [smem:[#allocation7_spill]]  ;;  %vm3543_vm3 = vcmask 130048   ;;  %s5662_s29 = smov [#allocation3]  }
  0x22   :  { %5118 = vmatprep.subr.bf16.mxu0 %v5658_v3  ;;  %v126_v41 = vadd.f32 %v125_v34, %v124_v31  ;;  %v133_v42 = vrot.slane %v132_v35, 1  ;;  %5138 = vmatpush3.bf16.msra.mxu1 %v5137_v33  ;;  %v115_v56 = vld [vmem:[%s7052_s8 + $0x58] sm:$0xff]  ;;  %v5125_v57 = vpack.c.bf16 %v100_v50, %v99_v49  ;;  %v101_v58 = vld [vmem:[%s7050_s7 + $0x70] sm:$0xff]  ;;  %v116_v63 = vld [vmem:[%s7052_s8 + $0x60] sm:$0xff]  ;;  %s3851_s0 = sshll.u32 %s5662_s29, 4  ;;  %s3852_s0 = int_to_ptr.vmem [resolvable:$true] %s3851_s0 }
  0x23   :  { %5139 = vmatprep.subr.bf16.mxu1 %v5658_v3  ;;  %v102_v59 = vld [vmem:[%s7050_s7 + $0x78] sm:$0xff]  ;;  %v5146_v61 = vpack.c.bf16 %v115_v56, %v114_v55  ;;  %v117_v0 = vld [vmem:[%s7052_s8 + $0x68] sm:$0xff]  ;;  %v118_v13 = vld [vmem:[%s7052_s8 + $0x70] sm:$0xff]  ;;  %p5639_p1 = scmp.lt.s32.totalorder %s3852_s0, %s3852_s0 }
  0x24   :  { %v127_v44 = vmul.f32 0.125, %v126_v41  ;;  %v134_v45 = vadd.f32 %v133_v42, %v132_v35  ;;  %v5128_v1 = vpack.c.bf16 %v102_v59, %v101_v58  ;;  %v5149_v2 = vpack.c.bf16 %v117_v0, %v116_v63  ;;  %v3859_v7 = vld [vmem:[%s7053_s6] ss:$0 sm:$0xff]  ;;  %v119_v14 = vld [vmem:[%s7052_s8 + $0x78] sm:$0xff]  ;;  %v545_v29 = vld [vmem:[%s7022_s14 + $0x8] sm:$0xff] }
  0x25   :  { %5120 = vmatpush3.bf16.msra.mxu0 %v5119_v38  ;;  %v3860_v9 = vld [vmem:[%s7054_s3] ss:$0 sm:$0xff]  ;;  %v5152_v15 = vpack.c.bf16 %v119_v14, %v118_v13  ;;  %v547_v31 = vld [vmem:[%s7022_s14 + $0x18] sm:$0xff]  ;;  %v549_v34 = vld [vmem:[%s7022_s14 + $0x28] sm:$0xff] }
  0x26   :  { %5121 = vmatprep.subr.bf16.mxu0 %v5658_v3  ;;  %v135_v51 = vmul.f32 0.125, %v134_v45  ;;  %v136_v52 = vmul.f32 %v127_v44, %v127_v44  ;;  %5141 = vmatpush3.bf16.msra.mxu1 %v5140_v43  ;;  %v139_v4 = vsub.f32 %v5826_v10, %v127_v44  ;;  %v3861_v16 = vld [vmem:[%s7055_s2] ss:$0 sm:$0xff]  ;;  %v313_v27 = vld [vmem:[%s7056_s10 + $0x8] sm:$0xff]  ;;  %v550_v38 = vld [vmem:[%s7022_s14 + $0x30] sm:$0xff]  ;;  %s7059_s2 = sld [smem:[#allocation16_spill]] }
  0x27   :  { %5142 = vmatprep.subr.bf16.mxu1 %v5658_v3  ;;  %v312_v21 = vld [vmem:[%s7056_s10] sm:$0xff]  ;;  %v445_v37 = vld [vmem:[%s7020_s12 + $0x8] sm:$0xff]  ;;  %v551_v39 = vld [vmem:[%s7022_s14 + $0x38] sm:$0xff] }
  0x28   :  { %v137_v54 = vsub.f32 %v135_v51, %v136_v52  ;;  %v3862_v22 = vld [vmem:[%s7057_s1] ss:$0 sm:$0xff]  ;;  %v5198_v42 = vpack.c.bf16 %v551_v39, %v550_v38  ;;  %v553_v44 = vld [vmem:[%s7022_s14 + $0x48] sm:$0xff]  ;;  %v554_v46 = vld [vmem:[%s7022_s14 + $0x50] sm:$0xff] }
  0x29   :  { %5123 = vmatpush3.bf16.msra.mxu0 %v5122_v48  ;;  %v544_v28 = vld [vmem:[%s7022_s14] sm:$0xff]  ;;  %v555_v47 = vld [vmem:[%s7022_s14 + $0x58] sm:$0xff]  ;;  %v557_v50 = vld [vmem:[%s7022_s14 + $0x68] sm:$0xff] }
  0x2a   :  { %5124 = vmatprep.subr.bf16.mxu0 %v5658_v3  ;;  %v138_v60 = vmax.f32 %v137_v54, 0.0  ;;  %5144 = vmatpush3.bf16.msra.mxu1 %v5143_v53  ;;  %v5186_v30 = vpack.c.bf16 %v545_v29, %v544_v28  ;;  %v548_v33 = vld [vmem:[%s7022_s14 + $0x20] sm:$0xff]  ;;  %v5206_v48 = vpack.c.bf16 %v555_v47, %v554_v46  ;;  %v558_v52 = vld [vmem:[%s7022_s14 + $0x70] sm:$0xff]  ;;  %v559_v53 = vld [vmem:[%s7022_s14 + $0x78] sm:$0xff] }
  0x2b   :  { %5145 = vmatprep.subr.bf16.mxu1 %v5658_v3  ;;  %v5194_v35 = vpack.c.bf16 %v549_v34, %v548_v33  ;;  %v444_v36 = vld [vmem:[%s7020_s12] sm:$0xff]  ;;  %v5214_v54 = vpack.c.bf16 %v559_v53, %v558_v52  ;;  %v3871_v56 = vld [vmem:[%s7020_s12 + $0x88] sm:$0xff]  ;;  %v446_v63 = vld [vmem:[%s7020_s12 + $0x10] sm:$0xff] }
  0x2c   :  { %v140_v62 = vadd.f32 1e-05, %v138_v60  ;;  %v5154_v40 = vpack.c.bf16 %v445_v37, %v444_v36  ;;  %v5978_v41 = vld [vmem:[%s7058_s5] sm:$0xff]  ;;  %v6014_v58 = vld [vmem:[%s7058_s5 + $0x8] sm:$0xff]  ;;  %v447_v0 = vld [vmem:[%s7020_s12 + $0x18] sm:$0xff] }
  0x2d   :  { %5126 = vmatpush3.bf16.msra.mxu0 %v5125_v57  ;;  %v552_v43 = vld [vmem:[%s7022_s14 + $0x40] sm:$0xff]  ;;  %v450_v14 = vld [vmem:[%s7020_s12 + $0x30] sm:$0xff]  ;;  %v459_v38 = vld [vmem:[%s7020_s12 + $0x78] sm:$0xff] }
  0x2e   :  { %5127 = vmatprep.subr.bf16.mxu0 %v5658_v3  ;;  %5594 = vrsqrt.f32 %v140_v62  ;;  %5147 = vmatpush3.bf16.msra.mxu1 %v5146_v61  ;;  %v5202_v45 = vpack.c.bf16 %v553_v44, %v552_v43  ;;  %v556_v49 = vld [vmem:[%s7022_s14 + $0x60] sm:$0xff]  ;;  %v3880_v28 = vld [vmem:[%s7020_s12 + $0xd0] sm:$0xff] }
  0x2f   :  { %5148 = vmatprep.subr.bf16.mxu1 %v5658_v3  ;;  %v5210_v51 = vpack.c.bf16 %v557_v50, %v556_v49  ;;  %v3870_v55 = vld [vmem:[%s7020_s12 + $0x80] sm:$0xff]  ;;  %v458_v37 = vld [vmem:[%s7020_s12 + $0x70] sm:$0xff] }
  0x30   :  { %v5250_v57 = vpack.c.bf16 %v3871_v56, %v3870_v55  ;;  %v3882_v34 = vld [vmem:[%s7020_s12 + $0xe0] sm:$0xff]  ;;  %v3884_v39 = vld [vmem:[%s7020_s12 + $0xf0] sm:$0xff] }
  0x31   :  { %5129 = vmatpush3.bf16.msra.mxu0 %v5128_v1  ;;  %v3872_v1 = vld [vmem:[%s7020_s12 + $0x90] sm:$0xff]  ;;  %v642_v44 = vld [vmem:[%s7024_s16] sm:$0xff] }
  0x32   :  { %5150 = vmatpush3.bf16.msra.mxu1 %v5149_v2  ;;  %v5158_v2 = vpack.c.bf16 %v447_v0, %v446_v63  ;;  %v3906_v46 = vld [vmem:[%s7024_s16 + $0x80] sm:$0xff] }
  0x33   :  { %5151 = vmatprep.subr.bf16.mxu1 %v5658_v3 }
  0x36   :  { %5153 = vmatpush3.bf16.msra.mxu1 %v5152_v15  ;;  %v451_v15 = vld [vmem:[%s7020_s12 + $0x38] sm:$0xff] }
  0x37   :  { %5155 = vmatprep.subr.bf16.mxu1 %v5154_v40 }
  0x38   :  { %v5595_v5 = vpop.eup %5594 }
  0x39   :  { %v142_v8 = vmul.f32 %v5595_v5, %v139_v4  ;;  %v3873_v4 = vld [vmem:[%s7020_s12 + $0x98] sm:$0xff] }
  0x3a   :  { %v5254_v5 = vpack.c.bf16 %v3873_v4, %v3872_v1 }
  0x3b   :  { %v149_v11 = vmul.f32 %v3859_v7, %v142_v8  ;;  %v448_v7 = vld [vmem:[%s7020_s12 + $0x20] sm:$0xff]  ;;  %v449_v8 = vld [vmem:[%s7020_s12 + $0x28] sm:$0xff] }
  0x3d   :  { %v156_v12 = vadd.f32 %v3860_v9, %v149_v11  ;;  %v3874_v9 = vld [vmem:[%s7020_s12 + $0xa0] sm:$0xff]  ;;  %v5162_v11 = vpack.c.bf16 %v449_v8, %v448_v7 }
  0x3f   :  { %4447 = vmatmul.mubr.f32.vlgmr.msra.gmra.mrb[0].mxu0 %v156_v12  ;;  %v3875_v12 = vld [vmem:[%s7020_s12 + $0xa8] sm:$0xff] }
  0x40   :  { %4486 = vmatprep.mubr.msk.f32.mxu0 %vm314_vm1, %v312_v21  ;;  %v5258_v13 = vpack.c.bf16 %v3875_v12, %v3874_v9  ;;  %v453_v21 = vld [vmem:[%s7020_s12 + $0x48] sm:$0xff]  ;;  %v3865_v9 = vld [vmem:[%s7059_s2] ss:$0 sm:$0xff] }
  0x41   :  { %v3866_v12 = vld [vmem:[%s7019_s11] ss:$0 sm:$0xff] }
 0x112   :  { %v229_v17 = vpop.f32.mrb[0].mxu0 }
 0x113   :  { %v230_v18 = vadd.f32 %v3861_v16, %v229_v17  ;;  %v4448_v19 = vpop.f32.mrb[1].mxu0  ;;  %v3876_v16 = vld [vmem:[%s7020_s12 + $0xb0] sm:$0xff]  ;;  %v5166_v17 = vpack.c.bf16 %v451_v15, %v450_v14 }
 0x115   :  { %v233_v20 = vmax.f32 %v230_v18, 0.0  ;;  %v3877_v18 = vld [vmem:[%s7020_s12 + $0xb8] sm:$0xff] }
 0x116   :  { %v5262_v19 = vpack.c.bf16 %v3877_v18, %v3876_v16  ;;  %v645_v18 = vld [vmem:[%s7024_s16 + $0x18] sm:$0xff] }
 0x117   :  { %4482 = vmatmul.mubr.f32.vlgmr.msra.gmra.mrb[0].mxu1 %v233_v20  ;;  %v452_v20 = vld [vmem:[%s7020_s12 + $0x40] sm:$0xff] }
 0x118   :  { %5157 = vmatpush3.bf16.msra.mxu1 %v5154_v40  ;;  %v3885_v40 = vld [vmem:[%s7020_s12 + $0xf8] sm:$0xff] }
 0x119   :  { %5159 = vmatprep.subr.bf16.mxu1 %v5158_v2  ;;  %v5278_v43 = vpack.c.bf16 %v3885_v40, %v3884_v39 }
 0x11c   :  { %5161 = vmatpush3.bf16.msra.mxu1 %v5158_v2 }
 0x11d   :  { %5163 = vmatprep.subr.bf16.mxu1 %v5162_v11 }
 0x120   :  { %5165 = vmatpush3.bf16.msra.mxu1 %v5162_v11 }
 0x121   :  { %5167 = vmatprep.subr.bf16.mxu1 %v5166_v17 }
 0x124   :  { %5169 = vmatpush3.bf16.msra.mxu1 %v5166_v17 }
 0x1ea   :  { %v300_v23 = vpop.f32.mrb[0].mxu1 }
 0x1eb   :  { %v304_v24 = vadd.f32 %v300_v23, %v5826_v10  ;;  %v4483_v25 = vpop.f32.mrb[1].mxu1  ;;  %v546_v10 = vld [vmem:[%s7022_s14 + $0x10] sm:$0xff]  ;;  %v5170_v23 = vpack.c.bf16 %v453_v21, %v452_v20 }
 0x1ec   :  { %v5190_v32 = vpack.c.bf16 %v547_v31, %v546_v10  ;;  %v3881_v10 = vld [vmem:[%s7020_s12 + $0xd8] sm:$0xff]  ;;  %v457_v31 = vld [vmem:[%s7020_s12 + $0x68] sm:$0xff] }
 0x1ed   :  { %v311_v26 = vadd.f32 %v3862_v22, %v304_v24  ;;  %v3878_v22 = vld [vmem:[%s7020_s12 + $0xc0] sm:$0xff]  ;;  %v3879_v24 = vld [vmem:[%s7020_s12 + $0xc8] sm:$0xff]  ;;  %5171 = vmatprep.subr.bf16.mxu1 %v5170_v23 }
 0x1ee   :  { %v5266_v25 = vpack.c.bf16 %v3879_v24, %v3878_v22  ;;  %5173 = vmatpush3.bf16.msra.mxu1 %v5170_v23  ;;  %v646_v24 = vld [vmem:[%s7024_s16 + $0x20] sm:$0xff] }
 0x1ef   :  { %4484 = vmatprep.subr.mxu0 %v311_v26 }
 0x1f0   :  { %4485 = vmatpush3.msra.mxu0 %v311_v26  ;;  %v454_v26 = vld [vmem:[%s7020_s12 + $0x50] sm:$0xff] }
 0x1f1   :  { %4487 = vmatmul.mubr.msk.f32.vlgmr.msra.gmra.mrb[2].mxu0 %vm314_vm1, %v313_v27  ;;  %5187 = vmatprep.subr.bf16.mxu0 %v5186_v30  ;;  %v455_v27 = vld [vmem:[%s7020_s12 + $0x58] sm:$0xff] }
 0x1f2   :  { %5189 = vmatpush3.bf16.msra.mxu0 %v5186_v30  ;;  %4556 = vmatprep.mubr.f32.mxu0 %v5978_v41  ;;  %v5174_v29 = vpack.c.bf16 %v455_v27, %v454_v26  ;;  %v456_v30 = vld [vmem:[%s7020_s12 + $0x60] sm:$0xff]  ;;  %v3911_v27 = vld [vmem:[%s7024_s16 + $0xa8] sm:$0xff] }
 0x1f3   :  { %5191 = vmatprep.subr.bf16.mxu0 %v5190_v32  ;;  %v5178_v33 = vpack.c.bf16 %v457_v31, %v456_v30  ;;  %v3910_v26 = vld [vmem:[%s7024_s16 + $0xa0] sm:$0xff]  ;;  %v649_v30 = vld [vmem:[%s7024_s16 + $0x38] sm:$0xff]  ;;  %v3912_v31 = vld [vmem:[%s7024_s16 + $0xb0] sm:$0xff] }
 0x1f4   :  { %5175 = vmatprep.subr.bf16.mxu1 %v5174_v29 }
 0x1f5   :  { %5177 = vmatpush3.bf16.msra.mxu1 %v5174_v29  ;;  %v5322_v29 = vpack.c.bf16 %v3911_v27, %v3910_v26  ;;  %v3948_v26 = vld [vmem:[%s7022_s14 + $0x130] sm:$0xff]  ;;  %v3949_v27 = vld [vmem:[%s7022_s14 + $0x138] sm:$0xff] }
 0x1f6   :  { %5193 = vmatpush3.bf16.msra.mxu0 %v5190_v32  ;;  %v5270_v32 = vpack.c.bf16 %v3881_v10, %v3880_v28  ;;  %5179 = vmatprep.subr.bf16.mxu1 %v5178_v33  ;;  %v648_v10 = vld [vmem:[%s7024_s16 + $0x30] sm:$0xff] }
 0x1f7   :  { %5195 = vmatprep.subr.bf16.mxu0 %v5194_v35 }
 0x1f9   :  { %5181 = vmatpush3.bf16.msra.mxu1 %v5178_v33  ;;  %v5230_v33 = vpack.c.bf16 %v649_v30, %v648_v10  ;;  %v3896_v10 = vld [vmem:[%s7022_s14 + $0xc0] sm:$0xff]  ;;  %v3897_v30 = vld [vmem:[%s7022_s14 + $0xc8] sm:$0xff] }
 0x1fa   :  { %5197 = vmatpush3.bf16.msra.mxu0 %v5194_v35  ;;  %v3883_v35 = vld [vmem:[%s7020_s12 + $0xe8] sm:$0xff] }
 0x1fb   :  { %5199 = vmatprep.subr.bf16.mxu0 %v5198_v42  ;;  %v5274_v36 = vpack.c.bf16 %v3883_v35, %v3882_v34  ;;  %v650_v35 = vld [vmem:[%s7024_s16 + $0x40] sm:$0xff] }
 0x1fe   :  { %5201 = vmatpush3.bf16.msra.mxu0 %v5198_v42  ;;  %v5182_v42 = vpack.c.bf16 %v459_v38, %v458_v37  ;;  %v3914_v37 = vld [vmem:[%s7024_s16 + $0xc0] sm:$0xff]  ;;  %v3915_v38 = vld [vmem:[%s7024_s16 + $0xc8] sm:$0xff] }
 0x1ff   :  { %5203 = vmatprep.subr.bf16.mxu0 %v5202_v45  ;;  %v5330_v40 = vpack.c.bf16 %v3915_v38, %v3914_v37  ;;  %v3952_v37 = vld [vmem:[%s7022_s14 + $0x150] sm:$0xff]  ;;  %v3953_v38 = vld [vmem:[%s7022_s14 + $0x158] sm:$0xff] }
 0x200   :  { %5183 = vmatprep.subr.bf16.mxu1 %v5182_v42 }
 0x201   :  { %5185 = vmatpush3.bf16.msra.mxu1 %v5182_v42  ;;  %v652_v42 = vld [vmem:[%s7024_s16 + $0x50] sm:$0xff] }
 0x202   :  { %5205 = vmatpush3.bf16.msra.mxu0 %v5202_v45  ;;  %v643_v45 = vld [vmem:[%s7024_s16 + $0x8] sm:$0xff] }
 0x203   :  { %5207 = vmatprep.subr.bf16.mxu0 %v5206_v48  ;;  %v5218_v47 = vpack.c.bf16 %v643_v45, %v642_v44  ;;  %v3916_v44 = vld [vmem:[%s7024_s16 + $0xd0] sm:$0xff]  ;;  %v3917_v45 = vld [vmem:[%s7024_s16 + $0xd8] sm:$0xff] }
 0x205   :  { %5219 = vmatprep.subr.bf16.mxu1 %v5218_v47 }
 0x206   :  { %5209 = vmatpush3.bf16.msra.mxu0 %v5206_v48  ;;  %v3907_v48 = vld [vmem:[%s7024_s16 + $0x88] sm:$0xff] }
 0x207   :  { %5211 = vmatprep.subr.bf16.mxu0 %v5210_v51  ;;  %v5314_v49 = vpack.c.bf16 %v3907_v48, %v3906_v46  ;;  %v654_v48 = vld [vmem:[%s7024_s16 + $0x60] sm:$0xff] }
 0x20a   :  { %5213 = vmatpush3.bf16.msra.mxu0 %v5210_v51 }
 0x20b   :  { %5215 = vmatprep.subr.bf16.mxu0 %v5214_v54 }
 0x20e   :  { %5217 = vmatpush3.bf16.msra.mxu0 %v5214_v54 }
 0x20f   :  { %5251 = vmatprep.subr.bf16.mxu0 %v5250_v57 }
 0x211   :  { %4557 = vmatmul.mubr.f32.vlgmr.msra.gmra.mrb[4].mxu0 %v6014_v58 }
 0x212   :  { %5253 = vmatpush3.bf16.msra.mxu0 %v5250_v57 }
 0x213   :  { %5255 = vmatprep.subr.bf16.mxu0 %v5254_v5 }
 0x216   :  { %5257 = vmatpush3.bf16.msra.mxu0 %v5254_v5 }
 0x217   :  { %5259 = vmatprep.subr.bf16.mxu0 %v5258_v13 }
 0x21a   :  { %5261 = vmatpush3.bf16.msra.mxu0 %v5258_v13 }
 0x21b   :  { %5263 = vmatprep.subr.bf16.mxu0 %v5262_v19 }
 0x21e   :  { %5265 = vmatpush3.bf16.msra.mxu0 %v5262_v19  ;;  %v3908_v19 = vld [vmem:[%s7024_s16 + $0x90] sm:$0xff] }
 0x21f   :  { %5267 = vmatprep.subr.bf16.mxu0 %v5266_v25 }
 0x222   :  { %5269 = vmatpush3.bf16.msra.mxu0 %v5266_v25  ;;  %v647_v25 = vld [vmem:[%s7024_s16 + $0x28] sm:$0xff] }
 0x223   :  { %5271 = vmatprep.subr.bf16.mxu0 %v5270_v32  ;;  %v5226_v28 = vpack.c.bf16 %v647_v25, %v646_v24  ;;  %v3894_v24 = vld [vmem:[%s7022_s14 + $0xb0] sm:$0xff]  ;;  %v3895_v25 = vld [vmem:[%s7022_s14 + $0xb8] sm:$0xff] }
 0x226   :  { %5273 = vmatpush3.bf16.msra.mxu0 %v5270_v32  ;;  %v3913_v32 = vld [vmem:[%s7024_s16 + $0xb8] sm:$0xff] }
 0x227   :  { %5275 = vmatprep.subr.bf16.mxu0 %v5274_v36  ;;  %v5326_v34 = vpack.c.bf16 %v3913_v32, %v3912_v31  ;;  %v3950_v31 = vld [vmem:[%s7022_s14 + $0x140] sm:$0xff]  ;;  %v3951_v32 = vld [vmem:[%s7022_s14 + $0x148] sm:$0xff] }
 0x22a   :  { %5277 = vmatpush3.bf16.msra.mxu0 %v5274_v36  ;;  %v651_v36 = vld [vmem:[%s7024_s16 + $0x48] sm:$0xff] }
 0x22b   :  { %5279 = vmatprep.subr.bf16.mxu0 %v5278_v43  ;;  %v5234_v39 = vpack.c.bf16 %v651_v36, %v650_v35  ;;  %v3898_v35 = vld [vmem:[%s7022_s14 + $0xd0] sm:$0xff]  ;;  %v3899_v36 = vld [vmem:[%s7022_s14 + $0xd8] sm:$0xff] }
 0x22e   :  { %5281 = vmatpush3.bf16.msra.mxu0 %v5278_v43  ;;  %v653_v43 = vld [vmem:[%s7024_s16 + $0x58] sm:$0xff] }
 0x22f   :  { %5315 = vmatprep.subr.bf16.mxu0 %v5314_v49  ;;  %v5238_v46 = vpack.c.bf16 %v653_v43, %v652_v42  ;;  %v3900_v42 = vld [vmem:[%s7022_s14 + $0xe0] sm:$0xff]  ;;  %v3901_v43 = vld [vmem:[%s7022_s14 + $0xe8] sm:$0xff] }
 0x2c4   :  { %v6017_v59 = vpop.f32.mrb[2].mxu0 }
 0x2c5   :  { %v6019_v60 = vpop.f32.mrb[3].mxu0  ;;  %v403_v62 = vmul.f32 %v6017_v59, %v6017_v59 }
 0x2c6   :  { %396 = vadd.xlane.f32.xlu0 %v6019_v60  ;;  %v402_v61 = vmul.f32 %v6019_v60, %v6019_v60 }
 0x2c8   :  { %404 = vadd.xlane.f32.xlu1 %v402_v61 }
 0x2ca   :  { %398 = vadd.xlane.f32.xlu0 %v6017_v59 }
 0x2cc   :  { %406 = vadd.xlane.f32.xlu1 %v403_v62 }
 0x353   :  { %v397_v50 = vpop.xlane.xlu0 %396 }
 0x354   :  { %v400_v51 = vmul.f32 0.03125, %v397_v50  ;;  %v3918_v50 = vld [vmem:[%s7024_s16 + $0xe0] sm:$0xff] }
 0x355   :  { %v405_v52 = vpop.xlane.xlu1 %404 }
 0x356   :  { %v410_v53 = vmul.f32 %v400_v51, %v400_v51  ;;  %v408_v54 = vmul.f32 0.03125, %v405_v52  ;;  %v416_v7 = vsub.f32 %v6019_v60, %v400_v51  ;;  %v644_v60 = vld [vmem:[%s7024_s16 + $0x10] sm:$0xff]  ;;  %v3919_v51 = vld [vmem:[%s7024_s16 + $0xe8] sm:$0xff] }
 0x357   :  { %v399_v55 = vpop.xlane.xlu0 %398  ;;  %v5222_v22 = vpack.c.bf16 %v645_v18, %v644_v60 }
 0x358   :  { %v412_v56 = vsub.f32 %v408_v54, %v410_v53  ;;  %v401_v57 = vmul.f32 0.03125, %v399_v55  ;;  %v5338_v53 = vpack.c.bf16 %v3919_v51, %v3918_v50  ;;  %v656_v54 = vld [vmem:[%s7024_s16 + $0x70] sm:$0xff]  ;;  %v657_v55 = vld [vmem:[%s7024_s16 + $0x78] sm:$0xff] }
 0x359   :  { %v407_v61 = vpop.xlane.xlu1 %406  ;;  %v3956_v50 = vld [vmem:[%s7022_s14 + $0x170] sm:$0xff]  ;;  %v3957_v51 = vld [vmem:[%s7022_s14 + $0x178] sm:$0xff] }
 0x35a   :  { %v414_v62 = vmax.f32 %v412_v56, 0.0  ;;  %v411_v63 = vmul.f32 %v401_v57, %v401_v57  ;;  %v409_v0 = vmul.f32 0.03125, %v407_v61  ;;  %v417_v13 = vsub.f32 %v6017_v59, %v401_v57  ;;  %v3909_v59 = vld [vmem:[%s7024_s16 + $0x98] sm:$0xff]  ;;  %v3920_v56 = vld [vmem:[%s7024_s16 + $0xf0] sm:$0xff] }
 0x35b   :  { %v5318_v23 = vpack.c.bf16 %v3909_v59, %v3908_v19  ;;  %v3921_v57 = vld [vmem:[%s7024_s16 + $0xf8] sm:$0xff]  ;;  %v5246_v61 = vpack.c.bf16 %v657_v55, %v656_v54  ;;  %v3893_v19 = vld [vmem:[%s7022_s14 + $0xa8] sm:$0xff]  ;;  %v3946_v59 = vld [vmem:[%s7022_s14 + $0x120] sm:$0xff] }
 0x35c   :  { %v418_v1 = vadd.f32 1e-05, %v414_v62  ;;  %v413_v2 = vsub.f32 %v409_v0, %v411_v63  ;;  %v5342_v62 = vpack.c.bf16 %v3921_v57, %v3920_v56  ;;  %v3888_v63 = vld [vmem:[%s7022_s14 + $0x80] sm:$0xff]  ;;  %v3889_v0 = vld [vmem:[%s7022_s14 + $0x88] sm:$0xff] }
 0x35d   :  { %v3924_v54 = vld [vmem:[%s7020_s12 + $0x100] sm:$0xff]  ;;  %v3925_v55 = vld [vmem:[%s7020_s12 + $0x108] sm:$0xff] }
 0x35e   :  { %5596 = vrsqrt.f32 %v418_v1  ;;  %v415_v4 = vmax.f32 %v413_v2, 0.0  ;;  %v3942_v1 = vld [vmem:[%s7022_s14 + $0x100] sm:$0xff]  ;;  %v3943_v2 = vld [vmem:[%s7022_s14 + $0x108] sm:$0xff] }
 0x35f   :  { %v3978_v56 = vld [vmem:[%s7020_s12 + $0x180] sm:$0xff]  ;;  %v3979_v57 = vld [vmem:[%s7020_s12 + $0x188] sm:$0xff] }
 0x360   :  { %v419_v5 = vadd.f32 1e-05, %v415_v4  ;;  %v5282_v4 = vpack.c.bf16 %v3889_v0, %v3888_v63  ;;  %v3926_v63 = vld [vmem:[%s7020_s12 + $0x110] sm:$0xff]  ;;  %v3927_v0 = vld [vmem:[%s7020_s12 + $0x118] sm:$0xff] }
 0x362   :  { %5598 = vrsqrt.f32 %v419_v5  ;;  %v5378_v5 = vpack.c.bf16 %v3943_v2, %v3942_v1  ;;  %v3980_v1 = vld [vmem:[%s7020_s12 + $0x190] sm:$0xff]  ;;  %v3981_v2 = vld [vmem:[%s7020_s12 + $0x198] sm:$0xff] }
 0x368   :  { %v5597_v8 = vpop.eup %5596 }
 0x369   :  { %v422_v11 = vmul.f32 %v5597_v8, %v416_v7  ;;  %v3890_v7 = vld [vmem:[%s7022_s14 + $0x90] sm:$0xff]  ;;  %v3891_v8 = vld [vmem:[%s7022_s14 + $0x98] sm:$0xff] }
 0x36b   :  { %v431_v14 = vmul.f32 %v3865_v9, %v422_v11  ;;  %v3945_v11 = vld [vmem:[%s7022_s14 + $0x118] sm:$0xff] }
 0x36c   :  { %v5599_v15 = vpop.eup %5598 }
 0x36d   :  { %v6131_v16 = vadd.f32 %v3866_v12, %v431_v14  ;;  %v423_v17 = vmul.f32 %v5599_v15, %v417_v13  ;;  %v6252_v13 = vld [vmem:[%s7023_s15] ss:$0 sm:$0xff]  ;;  %v5286_v14 = vpack.c.bf16 %v3891_v8, %v3890_v7  ;;  %v3929_v8 = vld [vmem:[%s7020_s12 + $0x128] sm:$0xff] }
 0x36e   :  { %v3928_v7 = vld [vmem:[%s7020_s12 + $0x120] sm:$0xff] }
 0x36f   :  { %4521 = vmatprep.mubr.f32.mxu1 %v6131_v16  ;;  %4626 = vmatprep.mubr.f32.mxu0 %v6131_v16  ;;  %v432_v20 = vmul.f32 %v3865_v9, %v423_v17  ;;  %v3944_v9 = vld [vmem:[%s7022_s14 + $0x110] sm:$0xff]  ;;  %v3892_v17 = vld [vmem:[%s7022_s14 + $0xa0] sm:$0xff] }
 0x370   :  { %v5382_v15 = vpack.c.bf16 %v3945_v11, %v3944_v9  ;;  %v3982_v9 = vld [vmem:[%s7020_s12 + $0x1a0] sm:$0xff]  ;;  %v3983_v11 = vld [vmem:[%s7020_s12 + $0x1a8] sm:$0xff] }
 0x371   :  { %v6147_v21 = vadd.f32 %v3866_v12, %v432_v20  ;;  %v4558_v12 = vpop.f32.mrb[4].mxu0  ;;  %v3947_v20 = vld [vmem:[%s7022_s14 + $0x128] sm:$0xff] }
 0x372   :  { %v6258_v60 = vadd.f32 %v4558_v12, %v6252_v13  ;;  %v6260_v18 = vpop.f32.mrb[5].mxu0  ;;  %v5354_v12 = vpack.c.bf16 %v3929_v8, %v3928_v7  ;;  %v4021_v7 = vld [vmem:[%s7024_s16 + $0x1b8] sm:$0xff] }
 0x373   :  { %4522 = vmatmul.mubr.f32.vlgmr.msra.gmra.mrb[2].mxu1 %v6147_v21  ;;  %4627 = vmatmul.mubr.f32.vlgmr.msra.gmra.mrb[6].mxu0 %v6147_v21 }
 0x374   :  { %5221 = vmatpush3.bf16.msra.mxu1 %v5218_v47  ;;  %5317 = vmatpush3.bf16.msra.mxu0 %v5314_v49  ;;  %v5334_v47 = vpack.c.bf16 %v3917_v45, %v3916_v44  ;;  %v655_v49 = vld [vmem:[%s7024_s16 + $0x68] sm:$0xff]  ;;  %v3954_v44 = vld [vmem:[%s7022_s14 + $0x160] sm:$0xff] }
 0x375   :  { %5223 = vmatprep.subr.bf16.mxu1 %v5222_v22  ;;  %5319 = vmatprep.subr.bf16.mxu0 %v5318_v23  ;;  %v5242_v52 = vpack.c.bf16 %v655_v49, %v654_v48  ;;  %v3955_v45 = vld [vmem:[%s7022_s14 + $0x168] sm:$0xff]  ;;  %v3902_v48 = vld [vmem:[%s7022_s14 + $0xf0] sm:$0xff]  ;;  %v3903_v49 = vld [vmem:[%s7022_s14 + $0xf8] sm:$0xff] }
 0x376   :  { %4591 = vmatprep.mubr.f32.mxu1 %v5978_v41  ;;  %4696 = vmatprep.mubr.f32.mxu0 %v5978_v41 }
 0x378   :  { %5225 = vmatpush3.bf16.msra.mxu1 %v5222_v22  ;;  %5321 = vmatpush3.bf16.msra.mxu0 %v5318_v23  ;;  %v5290_v22 = vpack.c.bf16 %v3893_v19, %v3892_v17  ;;  %v5386_v23 = vpack.c.bf16 %v3947_v20, %v3946_v59  ;;  %v3931_v17 = vld [vmem:[%s7020_s12 + $0x138] sm:$0xff]  ;;  %v3984_v19 = vld [vmem:[%s7020_s12 + $0x1b0] sm:$0xff] }
 0x379   :  { %5227 = vmatprep.subr.bf16.mxu1 %v5226_v28  ;;  %5323 = vmatprep.subr.bf16.mxu0 %v5322_v29 }
 0x37c   :  { %5229 = vmatpush3.bf16.msra.mxu1 %v5226_v28  ;;  %5325 = vmatpush3.bf16.msra.mxu0 %v5322_v29  ;;  %v5294_v28 = vpack.c.bf16 %v3895_v25, %v3894_v24  ;;  %v5390_v29 = vpack.c.bf16 %v3949_v27, %v3948_v26  ;;  %v3986_v24 = vld [vmem:[%s7020_s12 + $0x1c0] sm:$0xff]  ;;  %v3987_v25 = vld [vmem:[%s7020_s12 + $0x1c8] sm:$0xff] }
 0x37d   :  { %5231 = vmatprep.subr.bf16.mxu1 %v5230_v33  ;;  %5327 = vmatprep.subr.bf16.mxu0 %v5326_v34  ;;  %v5458_v27 = vpack.c.bf16 %v3987_v25, %v3986_v24  ;;  %v3972_v24 = vld [vmem:[%s7024_s16 + $0x160] sm:$0xff]  ;;  %v3973_v25 = vld [vmem:[%s7024_s16 + $0x168] sm:$0xff] }
 0x380   :  { %5233 = vmatpush3.bf16.msra.mxu1 %v5230_v33  ;;  %5329 = vmatpush3.bf16.msra.mxu0 %v5326_v34  ;;  %v5298_v33 = vpack.c.bf16 %v3897_v30, %v3896_v10  ;;  %v5394_v34 = vpack.c.bf16 %v3951_v32, %v3950_v31  ;;  %v3988_v10 = vld [vmem:[%s7020_s12 + $0x1d0] sm:$0xff]  ;;  %v3989_v30 = vld [vmem:[%s7020_s12 + $0x1d8] sm:$0xff] }
 0x381   :  { %5235 = vmatprep.subr.bf16.mxu1 %v5234_v39  ;;  %5331 = vmatprep.subr.bf16.mxu0 %v5330_v40  ;;  %v5462_v32 = vpack.c.bf16 %v3989_v30, %v3988_v10  ;;  %v3974_v10 = vld [vmem:[%s7024_s16 + $0x170] sm:$0xff]  ;;  %v3975_v30 = vld [vmem:[%s7024_s16 + $0x178] sm:$0xff] }
 0x384   :  { %5237 = vmatpush3.bf16.msra.mxu1 %v5234_v39  ;;  %5333 = vmatpush3.bf16.msra.mxu0 %v5330_v40  ;;  %v5302_v39 = vpack.c.bf16 %v3899_v36, %v3898_v35  ;;  %v5398_v40 = vpack.c.bf16 %v3953_v38, %v3952_v37  ;;  %v3990_v35 = vld [vmem:[%s7020_s12 + $0x1e0] sm:$0xff]  ;;  %v3991_v36 = vld [vmem:[%s7020_s12 + $0x1e8] sm:$0xff] }
 0x385   :  { %5239 = vmatprep.subr.bf16.mxu1 %v5238_v46  ;;  %5335 = vmatprep.subr.bf16.mxu0 %v5334_v47  ;;  %v5466_v38 = vpack.c.bf16 %v3991_v36, %v3990_v35  ;;  %v3996_v35 = vld [vmem:[%s7022_s14 + $0x180] sm:$0xff]  ;;  %v3997_v36 = vld [vmem:[%s7022_s14 + $0x188] sm:$0xff] }
 0x388   :  { %5241 = vmatpush3.bf16.msra.mxu1 %v5238_v46  ;;  %5337 = vmatpush3.bf16.msra.mxu0 %v5334_v47  ;;  %v5306_v46 = vpack.c.bf16 %v3901_v43, %v3900_v42  ;;  %v5402_v47 = vpack.c.bf16 %v3955_v45, %v3954_v44  ;;  %v3992_v42 = vld [vmem:[%s7020_s12 + $0x1f0] sm:$0xff]  ;;  %v3993_v43 = vld [vmem:[%s7020_s12 + $0x1f8] sm:$0xff] }
 0x389   :  { %5243 = vmatprep.subr.bf16.mxu1 %v5242_v52  ;;  %5339 = vmatprep.subr.bf16.mxu0 %v5338_v53  ;;  %v5470_v45 = vpack.c.bf16 %v3993_v43, %v3992_v42  ;;  %v4000_v43 = vld [vmem:[%s7022_s14 + $0x1a0] sm:$0xff] }
 0x38c   :  { %5245 = vmatpush3.bf16.msra.mxu1 %v5242_v52  ;;  %5341 = vmatpush3.bf16.msra.mxu0 %v5338_v53  ;;  %v5310_v52 = vpack.c.bf16 %v3903_v49, %v3902_v48  ;;  %v5406_v53 = vpack.c.bf16 %v3957_v51, %v3956_v50  ;;  %v4014_v48 = vld [vmem:[%s7024_s16 + $0x180] sm:$0xff]  ;;  %v4015_v49 = vld [vmem:[%s7024_s16 + $0x188] sm:$0xff]  ;;  %v3962_v51 = vld [vmem:[%s7024_s16 + $0x110] sm:$0xff] }
 0x38d   :  { %5247 = vmatprep.subr.bf16.mxu1 %v5246_v61  ;;  %5343 = vmatprep.subr.bf16.mxu0 %v5342_v62 }
 0x390   :  { %5249 = vmatpush3.bf16.msra.mxu1 %v5246_v61  ;;  %5345 = vmatpush3.bf16.msra.mxu0 %v5342_v62  ;;  %v5346_v61 = vpack.c.bf16 %v3925_v55, %v3924_v54  ;;  %v5442_v62 = vpack.c.bf16 %v3979_v57, %v3978_v56  ;;  %v4016_v54 = vld [vmem:[%s7024_s16 + $0x190] sm:$0xff]  ;;  %v4017_v55 = vld [vmem:[%s7024_s16 + $0x198] sm:$0xff]  ;;  %v3964_v57 = vld [vmem:[%s7024_s16 + $0x120] sm:$0xff] }
 0x391   :  { %5283 = vmatprep.subr.bf16.mxu1 %v5282_v4  ;;  %5379 = vmatprep.subr.bf16.mxu0 %v5378_v5 }
 0x393   :  { %4592 = vmatmul.mubr.f32.vlgmr.msra.gmra.mrb[4].mxu1 %v6014_v58  ;;  %4697 = vmatmul.mubr.f32.vlgmr.msra.gmra.mrb[8].mxu0 %v6014_v58 }
 0x394   :  { %5285 = vmatpush3.bf16.msra.mxu1 %v5282_v4  ;;  %5381 = vmatpush3.bf16.msra.mxu0 %v5378_v5  ;;  %v5350_v4 = vpack.c.bf16 %v3927_v0, %v3926_v63  ;;  %v5446_v5 = vpack.c.bf16 %v3981_v2, %v3980_v1  ;;  %v4018_v63 = vld [vmem:[%s7024_s16 + $0x1a0] sm:$0xff]  ;;  %v4019_v0 = vld [vmem:[%s7024_s16 + $0x1a8] sm:$0xff]  ;;  %v3966_v2 = vld [vmem:[%s7024_s16 + $0x130] sm:$0xff] }
 0x395   :  { %5287 = vmatprep.subr.bf16.mxu1 %v5286_v14  ;;  %5383 = vmatprep.subr.bf16.mxu0 %v5382_v15 }
 0x396   :  { %4661 = vmatprep.mubr.f32.mxu1 %v5978_v41  ;;  %4766 = vmatprep.mubr.f32.mxu0 %v5978_v41 }
 0x398   :  { %5289 = vmatpush3.bf16.msra.mxu1 %v5286_v14  ;;  %5385 = vmatpush3.bf16.msra.mxu0 %v5382_v15  ;;  %v5450_v14 = vpack.c.bf16 %v3983_v11, %v3982_v9  ;;  %v3930_v15 = vld [vmem:[%s7020_s12 + $0x130] sm:$0xff]  ;;  %v3968_v9 = vld [vmem:[%s7024_s16 + $0x140] sm:$0xff]  ;;  %v3969_v11 = vld [vmem:[%s7024_s16 + $0x148] sm:$0xff] }
 0x399   :  { %5291 = vmatprep.subr.bf16.mxu1 %v5290_v22  ;;  %5387 = vmatprep.subr.bf16.mxu0 %v5386_v23  ;;  %v5358_v59 = vpack.c.bf16 %v3931_v17, %v3930_v15  ;;  %v4023_v15 = vld [vmem:[%s7024_s16 + $0x1c8] sm:$0xff]  ;;  %v5426_v17 = vpack.c.bf16 %v3969_v11, %v3968_v9  ;;  %v6616_v9 = vld [vmem:[%s7025_s17 + $0x1] ss:$0 sm:$0xff] }
 0x39c   :  { %5293 = vmatpush3.bf16.msra.mxu1 %v5290_v22  ;;  %5389 = vmatpush3.bf16.msra.mxu0 %v5386_v23  ;;  %v3932_v22 = vld [vmem:[%s7020_s12 + $0x140] sm:$0xff]  ;;  %v3933_v23 = vld [vmem:[%s7020_s12 + $0x148] sm:$0xff] }
 0x39d   :  { %5295 = vmatprep.subr.bf16.mxu1 %v5294_v28  ;;  %5391 = vmatprep.subr.bf16.mxu0 %v5390_v29  ;;  %v5362_v26 = vpack.c.bf16 %v3933_v23, %v3932_v22  ;;  %v4025_v22 = vld [vmem:[%s7024_s16 + $0x1d8] sm:$0xff] }
 0x3a0   :  { %5297 = vmatpush3.bf16.msra.mxu1 %v5294_v28  ;;  %5393 = vmatpush3.bf16.msra.mxu0 %v5390_v29  ;;  %v3934_v28 = vld [vmem:[%s7020_s12 + $0x150] sm:$0xff]  ;;  %v3935_v29 = vld [vmem:[%s7020_s12 + $0x158] sm:$0xff] }
 0x3a1   :  { %5299 = vmatprep.subr.bf16.mxu1 %v5298_v33  ;;  %5395 = vmatprep.subr.bf16.mxu0 %v5394_v34  ;;  %v5366_v31 = vpack.c.bf16 %v3935_v29, %v3934_v28  ;;  %v4027_v28 = vld [vmem:[%s7024_s16 + $0x1e8] sm:$0xff]  ;;  %v5434_v29 = vpack.c.bf16 %v3973_v25, %v3972_v24 }
 0x3a4   :  { %5301 = vmatpush3.bf16.msra.mxu1 %v5298_v33  ;;  %5397 = vmatpush3.bf16.msra.mxu0 %v5394_v34  ;;  %v3936_v33 = vld [vmem:[%s7020_s12 + $0x160] sm:$0xff]  ;;  %v3937_v34 = vld [vmem:[%s7020_s12 + $0x168] sm:$0xff] }
 0x3a5   :  { %5303 = vmatprep.subr.bf16.mxu1 %v5302_v39  ;;  %5399 = vmatprep.subr.bf16.mxu0 %v5398_v40  ;;  %v5370_v37 = vpack.c.bf16 %v3937_v34, %v3936_v33  ;;  %v4029_v33 = vld [vmem:[%s7024_s16 + $0x1f8] sm:$0xff]  ;;  %v5438_v34 = vpack.c.bf16 %v3975_v30, %v3974_v10  ;;  %v6649_v30 = vld [vmem:[%s7021_s13 + $0x2] ss:$0 sm:$0xff] }
 0x3a8   :  { %5305 = vmatpush3.bf16.msra.mxu1 %v5302_v39  ;;  %5401 = vmatpush3.bf16.msra.mxu0 %v5398_v40  ;;  %v3938_v39 = vld [vmem:[%s7020_s12 + $0x170] sm:$0xff]  ;;  %v3939_v40 = vld [vmem:[%s7020_s12 + $0x178] sm:$0xff] }
 0x3a9   :  { %5307 = vmatprep.subr.bf16.mxu1 %v5306_v46  ;;  %5403 = vmatprep.subr.bf16.mxu0 %v5402_v47  ;;  %v5374_v44 = vpack.c.bf16 %v3939_v40, %v3938_v39  ;;  %v3998_v39 = vld [vmem:[%s7022_s14 + $0x190] sm:$0xff]  ;;  %v3999_v40 = vld [vmem:[%s7022_s14 + $0x198] sm:$0xff] }
 0x3aa   :  { %v5478_v42 = vpack.c.bf16 %v3999_v40, %v3998_v39 }
 0x3ac   :  { %5309 = vmatpush3.bf16.msra.mxu1 %v5306_v46  ;;  %5405 = vmatpush3.bf16.msra.mxu0 %v5402_v47  ;;  %v3960_v46 = vld [vmem:[%s7024_s16 + $0x100] sm:$0xff]  ;;  %v3961_v47 = vld [vmem:[%s7024_s16 + $0x108] sm:$0xff] }
 0x3ad   :  { %5311 = vmatprep.subr.bf16.mxu1 %v5310_v52  ;;  %5407 = vmatprep.subr.bf16.mxu0 %v5406_v53  ;;  %v5410_v50 = vpack.c.bf16 %v3961_v47, %v3960_v46  ;;  %v4002_v46 = vld [vmem:[%s7022_s14 + $0x1b0] sm:$0xff]  ;;  %v4003_v47 = vld [vmem:[%s7022_s14 + $0x1b8] sm:$0xff] }
 0x3b0   :  { %5313 = vmatpush3.bf16.msra.mxu1 %v5310_v52  ;;  %5409 = vmatpush3.bf16.msra.mxu0 %v5406_v53  ;;  %v3963_v52 = vld [vmem:[%s7024_s16 + $0x118] sm:$0xff]  ;;  %v5506_v53 = vpack.c.bf16 %v4015_v49, %v4014_v48  ;;  %v5486_v48 = vpack.c.bf16 %v4003_v47, %v4002_v46  ;;  %v4005_v49 = vld [vmem:[%s7022_s14 + $0x1c8] sm:$0xff]  ;;  %v1646_v47 = vlaneseq }
 0x3b1   :  { %5347 = vmatprep.subr.bf16.mxu1 %v5346_v61  ;;  %5443 = vmatprep.subr.bf16.mxu0 %v5442_v62  ;;  %v5414_v56 = vpack.c.bf16 %v3963_v52, %v3962_v51  ;;  %v4006_v51 = vld [vmem:[%s7022_s14 + $0x1d0] sm:$0xff]  ;;  %v4007_v52 = vld [vmem:[%s7022_s14 + $0x1d8] sm:$0xff] }
 0x3b3   :  { %4662 = vmatmul.mubr.f32.vlgmr.msra.gmra.mrb[6].mxu1 %v6014_v58  ;;  %4767 = vmatmul.mubr.f32.vlgmr.msra.gmra.mrb[10].mxu0 %v6014_v58 }
 0x3b4   :  { %5349 = vmatpush3.bf16.msra.mxu1 %v5346_v61  ;;  %4731 = vmatprep.mubr.f32.mxu1 %v6131_v16  ;;  %v3965_v61 = vld [vmem:[%s7024_s16 + $0x128] sm:$0xff] }
 0x3b5   :  { %5445 = vmatpush3.bf16.msra.mxu0 %v5442_v62  ;;  %4836 = vmatprep.mubr.f32.mxu0 %v6131_v16  ;;  %v3985_v16 = vld [vmem:[%s7020_s12 + $0x1b8] sm:$0xff]  ;;  %v5510_v62 = vpack.c.bf16 %v4017_v55, %v4016_v54  ;;  %v5418_v1 = vpack.c.bf16 %v3965_v61, %v3964_v57  ;;  %v4008_v54 = vld [vmem:[%s7022_s14 + $0x1e0] sm:$0xff]  ;;  %v4009_v55 = vld [vmem:[%s7022_s14 + $0x1e8] sm:$0xff] }
 0x3b6   :  { %5351 = vmatprep.subr.bf16.mxu1 %v5350_v4  ;;  %5447 = vmatprep.subr.bf16.mxu0 %v5446_v5  ;;  %v5454_v20 = vpack.c.bf16 %v3985_v16, %v3984_v19  ;;  %v3970_v19 = vld [vmem:[%s7024_s16 + $0x150] sm:$0xff]  ;;  %v3971_v16 = vld [vmem:[%s7024_s16 + $0x158] sm:$0xff] }
 0x3b7   :  { %v5430_v23 = vpack.c.bf16 %v3971_v16, %v3970_v19  ;;  %v4010_v57 = vld [vmem:[%s7022_s14 + $0x1f0] sm:$0xff]  ;;  %v4011_v61 = vld [vmem:[%s7022_s14 + $0x1f8] sm:$0xff] }
 0x3b8   :  { %5353 = vmatpush3.bf16.msra.mxu1 %v5350_v4  ;;  %v5514_v4 = vpack.c.bf16 %v4019_v0, %v4018_v63  ;;  %v634_v63 = vadd.f32 %v6252_v13, %v6260_v18  ;;  %v3867_v0 = vld [vmem:[%s7021_s13] ss:$0 sm:$0xff] }
 0x3b9   :  { %5449 = vmatpush3.bf16.msra.mxu0 %v5446_v5  ;;  %5355 = vmatprep.subr.bf16.mxu1 %v5354_v12  ;;  %v4020_v5 = vld [vmem:[%s7024_s16 + $0x1b0] sm:$0xff] }
 0x3ba   :  { %5451 = vmatprep.subr.bf16.mxu0 %v5450_v14 }
 0x3bc   :  { %5357 = vmatpush3.bf16.msra.mxu1 %v5354_v12  ;;  %v5518_v12 = vpack.c.bf16 %v4021_v7, %v4020_v5 }
 0x3bd   :  { %5453 = vmatpush3.bf16.msra.mxu0 %v5450_v14  ;;  %5359 = vmatprep.subr.bf16.mxu1 %v5358_v59  ;;  %v4022_v14 = vld [vmem:[%s7024_s16 + $0x1c0] sm:$0xff] }
 0x3be   :  { %5455 = vmatprep.subr.bf16.mxu0 %v5454_v20 }
 0x3c0   :  { %5361 = vmatpush3.bf16.msra.mxu1 %v5358_v59  ;;  %v5522_v59 = vpack.c.bf16 %v4023_v15, %v4022_v14 }
 0x3c1   :  { %5457 = vmatpush3.bf16.msra.mxu0 %v5454_v20  ;;  %5363 = vmatprep.subr.bf16.mxu1 %v5362_v26  ;;  %v4024_v20 = vld [vmem:[%s7024_s16 + $0x1d0] sm:$0xff] }
 0x3c2   :  { %5459 = vmatprep.subr.bf16.mxu0 %v5458_v27 }
 0x3c4   :  { %5365 = vmatpush3.bf16.msra.mxu1 %v5362_v26  ;;  %v5526_v26 = vpack.c.bf16 %v4025_v22, %v4024_v20  ;;  %v6632_v20 = vld [vmem:[%s7023_s15 + $0x2] ss:$0 sm:$0xff] }
 0x3c5   :  { %5461 = vmatpush3.bf16.msra.mxu0 %v5458_v27  ;;  %5367 = vmatprep.subr.bf16.mxu1 %v5366_v31  ;;  %v4026_v27 = vld [vmem:[%s7024_s16 + $0x1e0] sm:$0xff] }
 0x3c6   :  { %5463 = vmatprep.subr.bf16.mxu0 %v5462_v32 }
 0x3c8   :  { %5369 = vmatpush3.bf16.msra.mxu1 %v5366_v31  ;;  %v5530_v31 = vpack.c.bf16 %v4027_v28, %v4026_v27 }
 0x3c9   :  { %5465 = vmatpush3.bf16.msra.mxu0 %v5462_v32  ;;  %5371 = vmatprep.subr.bf16.mxu1 %v5370_v37  ;;  %v4028_v32 = vld [vmem:[%s7024_s16 + $0x1f0] sm:$0xff] }
 0x3ca   :  { %5467 = vmatprep.subr.bf16.mxu0 %v5466_v38 }
 0x3cc   :  { %5373 = vmatpush3.bf16.msra.mxu1 %v5370_v37  ;;  %v5534_v37 = vpack.c.bf16 %v4029_v33, %v4028_v32 }
 0x3cd   :  { %5469 = vmatpush3.bf16.msra.mxu0 %v5466_v38  ;;  %5375 = vmatprep.subr.bf16.mxu1 %v5374_v44  ;;  %v5474_v38 = vpack.c.bf16 %v3997_v36, %v3996_v35 }
 0x3ce   :  { %5471 = vmatprep.subr.bf16.mxu0 %v5470_v45 }
 0x3d0   :  { %5377 = vmatpush3.bf16.msra.mxu1 %v5374_v44  ;;  %v4001_v44 = vld [vmem:[%s7022_s14 + $0x1a8] sm:$0xff] }
 0x3d1   :  { %5473 = vmatpush3.bf16.msra.mxu0 %v5470_v45  ;;  %5411 = vmatprep.subr.bf16.mxu1 %v5410_v50  ;;  %v5482_v45 = vpack.c.bf16 %v4001_v44, %v4000_v43  ;;  %v6674_v43 = vld [vmem:[%s7023_s15 + $0x3] ss:$0 sm:$0xff] }
 0x3d2   :  { %5507 = vmatprep.subr.bf16.mxu0 %v5506_v53 }
 0x3d3   :  { %4732 = vmatmul.mubr.f32.vlgmr.msra.gmra.mrb[8].mxu1 %v6147_v21 }
 0x3d4   :  { %4837 = vmatmul.mubr.f32.vlgmr.msra.gmra.mrb[12].mxu0 %v6147_v21  ;;  %5413 = vmatpush3.bf16.msra.mxu1 %v5410_v50  ;;  %v3967_v21 = vld [vmem:[%s7024_s16 + $0x138] sm:$0xff]  ;;  %s7060_s16 = sld [smem:[#allocation9_spill]] }
 0x3d5   :  { %5415 = vmatprep.subr.bf16.mxu1 %v5414_v56  ;;  %4801 = vmatprep.mubr.f32.mxu1 %v5978_v41  ;;  %v5422_v8 = vpack.c.bf16 %v3967_v21, %v3966_v2 }
 0x3d6   :  { %5509 = vmatpush3.bf16.msra.mxu0 %v5506_v53  ;;  %4906 = vmatprep.mubr.f32.mxu0 %v5978_v41  ;;  %v5494_v53 = vpack.c.bf16 %v4007_v52, %v4006_v51 }
 0x3d7   :  { %5511 = vmatprep.subr.bf16.mxu0 %v5510_v62 }
 0x3d8   :  { %5417 = vmatpush3.bf16.msra.mxu1 %v5414_v56  ;;  %v5498_v56 = vpack.c.bf16 %v4009_v55, %v4008_v54 }
 0x3d9   :  { %5419 = vmatprep.subr.bf16.mxu1 %v5418_v1 }
 0x3da   :  { %5513 = vmatpush3.bf16.msra.mxu0 %v5510_v62  ;;  %v5502_v62 = vpack.c.bf16 %v4011_v61, %v4010_v57 }
 0x3db   :  { %5515 = vmatprep.subr.bf16.mxu0 %v5514_v4 }
 0x3dc   :  { %5421 = vmatpush3.bf16.msra.mxu1 %v5418_v1  ;;  %v3887_v1 = vld [vmem:[%s7021_s13 + $0x1] ss:$0 sm:$0xff] }
 0x3dd   :  { %5423 = vmatprep.subr.bf16.mxu1 %v5422_v8 }
 0x3de   :  { %5517 = vmatpush3.bf16.msra.mxu0 %v5514_v4 }
 0x3df   :  { %5519 = vmatprep.subr.bf16.mxu0 %v5518_v12 }
 0x3e0   :  { %5425 = vmatpush3.bf16.msra.mxu1 %v5422_v8  ;;  %v3869_v8 = vld [vmem:[%s7025_s17] ss:$0 sm:$0xff] }
 0x3e1   :  { %5427 = vmatprep.subr.bf16.mxu1 %v5426_v17 }
 0x3e2   :  { %5521 = vmatpush3.bf16.msra.mxu0 %v5518_v12 }
 0x3e3   :  { %5523 = vmatprep.subr.bf16.mxu0 %v5522_v59 }
 0x3e4   :  { %5429 = vmatpush3.bf16.msra.mxu1 %v5426_v17 }
 0x3e5   :  { %5431 = vmatprep.subr.bf16.mxu1 %v5430_v23 }
 0x3e6   :  { %5525 = vmatpush3.bf16.msra.mxu0 %v5522_v59  ;;  %v3905_v59 = vld [vmem:[%s7023_s15 + $0x1] ss:$0 sm:$0xff] }
 0x3e7   :  { %5527 = vmatprep.subr.bf16.mxu0 %v5526_v26 }
 0x3e8   :  { %5433 = vmatpush3.bf16.msra.mxu1 %v5430_v23 }
 0x3e9   :  { %5435 = vmatprep.subr.bf16.mxu1 %v5434_v29 }
 0x3ea   :  { %5529 = vmatpush3.bf16.msra.mxu0 %v5526_v26 }
 0x3eb   :  { %5531 = vmatprep.subr.bf16.mxu0 %v5530_v31 }
 0x3ec   :  { %5437 = vmatpush3.bf16.msra.mxu1 %v5434_v29 }
 0x3ed   :  { %5439 = vmatprep.subr.bf16.mxu1 %v5438_v34 }
 0x3ee   :  { %5533 = vmatpush3.bf16.msra.mxu0 %v5530_v31  ;;  %v6654_v31 = vld [vmem:[%s7021_s13 + $0x3] ss:$0 sm:$0xff] }
 0x3ef   :  { %5535 = vmatprep.subr.bf16.mxu0 %v5534_v37 }
 0x3f0   :  { %5441 = vmatpush3.bf16.msra.mxu1 %v5438_v34 }
 0x3f1   :  { %5475 = vmatprep.subr.bf16.mxu1 %v5474_v38 }
 0x3f2   :  { %5537 = vmatpush3.bf16.msra.mxu0 %v5534_v37 }
 0x3f3   :  { %4802 = vmatmul.mubr.f32.vlgmr.msra.gmra.mrb[10].mxu1 %v6014_v58  ;;  %4914 = vmatprep.subr.mxu0 %v5660_v6 }
 0x3f4   :  { %5477 = vmatpush3.bf16.msra.mxu1 %v5474_v38  ;;  %4871 = vmatprep.mubr.f32.mxu1 %v5978_v41  ;;  %v4004_v41 = vld [vmem:[%s7022_s14 + $0x1c0] sm:$0xff] }
 0x3f5   :  { %5479 = vmatprep.subr.bf16.mxu1 %v5478_v42  ;;  %4907 = vmatmul.mubr.f32.vlgmr.msra.gmra.mrb[14].mxu0 %v6014_v58  ;;  %v5490_v50 = vpack.c.bf16 %v4005_v49, %v4004_v41  ;;  %v3977_v38 = vld [vmem:[%s7025_s17 + $0x2] ss:$0 sm:$0xff]  ;;  %v5661_v41 = vmov -1e+30  }
 0x3f6   :  { %4916 = vmatprep.mubr.msk.f32.mxu0 %vm5659_vm0, %v5660_v6 }
 0x3f8   :  { %5481 = vmatpush3.bf16.msra.mxu1 %v5478_v42 }
 0x3f9   :  { %5483 = vmatprep.subr.bf16.mxu1 %v5482_v45 }
 0x3fc   :  { %5485 = vmatpush3.bf16.msra.mxu1 %v5482_v45 }
 0x3fd   :  { %5487 = vmatprep.subr.bf16.mxu1 %v5486_v48 }
 0x400   :  { %5489 = vmatpush3.bf16.msra.mxu1 %v5486_v48  ;;  %v1647_v48 = vand.u32 127, %v1646_v47 }
 0x401   :  { %5491 = vmatprep.subr.bf16.mxu1 %v5490_v50 }
 0x402   :  { %vm1648_vm2 = vcmp.lt.s32.totalorder %v1647_v48, 6 }
 0x403   :  { %v6681_v49 = vsel %vm1648_vm2, 0.0, %v5661_v41 }
 0x404   :  { %5493 = vmatpush3.bf16.msra.mxu1 %v5490_v50 }
 0x405   :  { %5495 = vmatprep.subr.bf16.mxu1 %v5494_v53 }
 0x408   :  { %5497 = vmatpush3.bf16.msra.mxu1 %v5494_v53 }
 0x409   :  { %5499 = vmatprep.subr.bf16.mxu1 %v5498_v56 }
 0x40c   :  { %5501 = vmatpush3.bf16.msra.mxu1 %v5498_v56 }
 0x40d   :  { %5503 = vmatprep.subr.bf16.mxu1 %v5502_v62 }
 0x410   :  { %5505 = vmatpush3.bf16.msra.mxu1 %v5502_v62 }
 0x411   :  { %4909 = vmatprep.subr.mxu1 %v5660_v6 }
 0x413   :  { %4872 = vmatmul.mubr.f32.vlgmr.msra.gmra.mrb[12].mxu1 %v6014_v58 }
 0x414   :  { %4911 = vmatprep.mubr.msk.f32.mxu1 %vm5659_vm0, %v5660_v6 }
 0x419   :  { %4910 = vmatpush3.xpose.msk.msra.mxu1 %vm314_vm1, %v634_v63 }
 0x41a   :  { %4919 = vmatprep.subr.mxu1 %v5660_v6 }
 0x446   :  { %v4523_v2 = vpop.f32.mrb[2].mxu1  ;;  %v4628_v58 = vpop.f32.mrb[6].mxu0 }
 0x447   :  { %v6603_v21 = vadd.f32 %v4523_v2, %v3867_v0  ;;  %v6605_v4 = vadd.f32 %v4628_v58, %v3887_v1  ;;  %v533_v5 = vpop.f32.mrb[3].mxu1  ;;  %v831_v13 = vpop.f32.mrb[7].mxu0 }
 0x448   :  { %v534_v18 = vadd.f32 %v3867_v0, %v533_v5  ;;  %v832_v24 = vadd.f32 %v3887_v1, %v831_v13 }
 0x44a   :  { %v542_v7 = vmul.f32 0.35355338, %v534_v18  ;;  %v840_v10 = vmul.f32 0.35355338, %v832_v24 }
 0x44c   :  { %4912 = vmatmul.mubr.msk.f32.vlgmr.msra.gmra.mrb[14].mxu1 %vm314_vm1, %v542_v7 }
 0x44d   :  { %4921 = vmatprep.mubr.msk.f32.mxu1 %vm5659_vm0, %v5660_v6 }
 0x466   :  { %v4593_v11 = vpop.f32.mrb[4].mxu1  ;;  %v4698_v12 = vpop.f32.mrb[8].mxu0 }
 0x467   :  { %v6618_v14 = vadd.f32 %v4593_v11, %v3869_v8  ;;  %v731_v15 = vpop.f32.mrb[5].mxu1  ;;  %v6621_v17 = vadd.f32 %v4698_v12, %v6616_v9  ;;  %v6623_v19 = vpop.f32.mrb[9].mxu0 }
 0x468   :  { %v732_v16 = vadd.f32 %v3869_v8, %v731_v15  ;;  %v6692_v8 = vld [vmem:[%s7025_s17 + $0x3] ss:$0 sm:$0xff] }
 0x46a   :  { %4915 = vmatpush3.msra.mxu0 %v732_v16 }
 0x46b   :  { %4924 = vmatprep.subr.mxu0 %v5660_v6 }
 0x486   :  { %v4663_v22 = vpop.f32.mrb[6].mxu1  ;;  %v4768_v23 = vpop.f32.mrb[10].mxu0 }
 0x487   :  { %v6634_v25 = vadd.f32 %v4663_v22, %v3905_v59  ;;  %v933_v26 = vpop.f32.mrb[7].mxu1  ;;  %v6637_v27 = vadd.f32 %v4768_v23, %v6632_v20  ;;  %v6639_v28 = vpop.f32.mrb[11].mxu0 }
 0x488   :  { %v934_v29 = vadd.f32 %v3905_v59, %v933_v26  ;;  %v1034_v59 = vadd.f32 %v6616_v9, %v6623_v19  ;;  %v6718_v9 = vld [vmem:[%s7026_s18 + $0x8] sm:$0xff] }
 0x48a   :  { %4920 = vmatpush3.xpose.msk.msra.mxu1 %vm314_vm1, %v934_v29  ;;  %v6708_v29 = vld [vmem:[%s7026_s18] sm:$0xff] }
 0x48b   :  { %4929 = vmatprep.subr.mxu1 %v5660_v6 }
 0x48d   :  { %4922 = vmatmul.mubr.msk.f32.vlgmr.msra.gmra.mrb[16].mxu1 %vm314_vm1, %v840_v10 }
 0x48e   :  { %4931 = vmatprep.mubr.msk.f32.mxu1 %vm5659_vm0, %v5660_v6  ;;  %4930 = vmatpush3.msra.mxu1 %v6718_v9 }
 0x48f   :  { %4939 = vmatprep.subr.mxu1 %v5660_v6 }
 0x4a6   :  { %v4733_v32 = vpop.f32.mrb[8].mxu1 }
 0x4a7   :  { %v6657_v33 = vadd.f32 %v4733_v32, %v6649_v30  ;;  %v4838_v34 = vpop.f32.mrb[12].mxu0  ;;  %v6659_v35 = vpop.f32.mrb[9].mxu1 }
 0x4a8   :  { %v6662_v36 = vadd.f32 %v4838_v34, %v6654_v31  ;;  %v6664_v37 = vpop.f32.mrb[13].mxu0  ;;  %v1134_v34 = vadd.f32 %v6649_v30, %v6659_v35 }
 0x4c6   :  { %v4803_v39 = vpop.f32.mrb[10].mxu1 }
 0x4c7   :  { %v6669_v40 = vadd.f32 %v4803_v39, %v3977_v38  ;;  %v1335_v42 = vpop.f32.mrb[11].mxu1  ;;  %v1236_v39 = vadd.f32 %v6632_v20, %v6639_v28 }
 0x4c8   :  { %v4908_v7 = vpop.f32.mrb[14].mxu0  ;;  %v1336_v19 = vadd.f32 %v3977_v38, %v1335_v42  ;;  %v1142_v38 = vmul.f32 0.35355338, %v1134_v34 }
 0x4c9   :  { %v6695_v11 = vadd.f32 %v4908_v7, %v6692_v8  ;;  %v6697_v12 = vpop.f32.mrb[15].mxu0 }
 0x4e6   :  { %v4873_v44 = vpop.f32.mrb[12].mxu1 }
 0x4e7   :  { %v6677_v45 = vadd.f32 %v4873_v44, %v6674_v43  ;;  %v6679_v46 = vpop.f32.mrb[13].mxu1 }
 0x51f   :  { %v1723_v50 = vpop.f32.mrb[14].mxu1 }
 0x520   :  { %v1724_v51 = vadd.f32 %v1723_v50, %v6681_v49  ;;  %v4913_v52 = vpop.f32.mrb[15].mxu1 }
 0x522   :  { %v1727_v53 = vsel %vm314_vm1, %v1724_v51, -inf }
 0x523   :  { %1728 = vmax.xlane.f32.xlu0 %v1727_v53 }
 0x560   :  { %v1884_v54 = vpop.f32.mrb[16].mxu1 }
 0x561   :  { %v1885_v55 = vadd.f32 %v1884_v54, %v6681_v49  ;;  %v4923_v56 = vpop.f32.mrb[17].mxu1 }
 0x563   :  { %v1888_v57 = vsel %vm314_vm1, %v1885_v55, -inf }
 0x564   :  { %1889 = vmax.xlane.f32.xlu1 %v1888_v57  ;;  %v6744_v57 = vld [vmem:[%s7026_s18 + $0x10] sm:$0xff] }
 0x5b0   :  { %v1729_v61 = vpop.xlane.xlu0 %1728 }
 0x5b1   :  { %v1730_v62 = vsub.f32 %v1724_v51, %v1729_v61 }
 0x5b3   :  { %v1731_v63 = vmul.f32 1.442695, %v1730_v62 }
 0x5b5   :  { %5600 = vpow2.f32 %v1731_v63  ;;  %v1436_v63 = vadd.f32 %v6654_v31, %v6664_v37  ;;  %v1638_v31 = vadd.f32 %v6692_v8, %v6697_v12 }
 0x5bf   :  { %v5601_v0 = vpop.eup %5600 }
 0x5c0   :  { %v1733_v1 = vsel %vm314_vm1, %v5601_v0, 0.0 }
 0x5c1   :  { %1734 = vadd.xlane.f32.xlu0 %v1733_v1  ;;  %v1538_v1 = vadd.f32 %v6674_v43, %v6679_v46 }
 0x5f1   :  { %v1890_v2 = vpop.xlane.xlu1 %1889 }
 0x5f2   :  { %v1891_v58 = vsub.f32 %v1885_v55, %v1890_v2  ;;  %v1444_v2 = vmul.f32 0.35355338, %v1436_v63 }
 0x5f4   :  { %v1892_v5 = vmul.f32 1.442695, %v1891_v58 }
 0x5f6   :  { %5602 = vpow2.f32 %v1892_v5 }
 0x600   :  { %v5603_v13 = vpop.eup %5602 }
 0x601   :  { %v1894_v18 = vsel %vm314_vm1, %v5603_v13, 0.0 }
 0x602   :  { %1895 = vadd.xlane.f32.xlu1 %v1894_v18 }
 0x64e   :  { %v1735_v15 = vpop.xlane.xlu0 %1734 }
 0x64f   :  { %5604 = vrcp.f32 %v1735_v15 }
 0x659   :  { %v5605_v16 = vpop.eup %5604 }
 0x65a   :  { %v1737_v22 = vmul.f32 %v5605_v16, %v5601_v0  ;;  %v6772_v16 = vld [vmem:[%s7026_s18 + $0x18] sm:$0xff] }
 0x65c   :  { %4917 = vmatmul.mubr.msk.f32.vlgmr.msra.gmra.mrb[16].mxu0 %vm314_vm1, %v1737_v22 }
 0x65d   :  { %4925 = vmatpush3.msra.mxu0 %v1034_v59  ;;  %4926 = vmatprep.mubr.msk.f32.mxu0 %vm5659_vm0, %v5660_v6 }
 0x65e   :  { %4934 = vmatprep.subr.mxu0 %v5660_v6 }
 0x68f   :  { %v1896_v23 = vpop.xlane.xlu1 %1895 }
 0x690   :  { %5606 = vrcp.f32 %v1896_v23 }
 0x69a   :  { %v5607_v24 = vpop.eup %5606 }
 0x69b   :  { %v1898_v26 = vmul.f32 %v5607_v24, %v5603_v13 }
 0x69d   :  { %4927 = vmatmul.mubr.msk.f32.vlgmr.msra.gmra.mrb[18].mxu0 %vm314_vm1, %v1898_v26 }
 0x69e   :  { %4935 = vmatpush3.msra.mxu0 %v6708_v29  ;;  %4936 = vmatprep.mubr.msk.f32.mxu0 %vm5659_vm0, %v5660_v6 }
 0x69f   :  { %4944 = vmatprep.subr.mxu0 %v5660_v6 }
 0x72f   :  { %v1807_v10 = vpop.f32.mrb[16].mxu0 }
 0x730   :  { %v4918_v32 = vpop.f32.mrb[17].mxu0  ;;  %4937 = vmatmul.mubr.msk.f32.vlgmr.msra.gmra.mrb[20].mxu0 %vm314_vm1, %v1807_v10  ;;  %v543_v10 = vmul.f32 0.35355338, %v6603_v21 }
 0x731   :  { %4945 = vmatpush3.msra.mxu0 %v1336_v19  ;;  %4946 = vmatprep.mubr.msk.f32.mxu0 %vm5659_vm0, %v5660_v6  ;;  %v841_v32 = vmul.f32 0.35355338, %v6605_v4 }
 0x732   :  { %4954 = vmatprep.subr.mxu0 %v5660_v6 }
 0x770   :  { %v1968_v44 = vpop.f32.mrb[18].mxu0 }
 0x771   :  { %v4928_v47 = vpop.f32.mrb[19].mxu0  ;;  %4932 = vmatmul.mubr.msk.f32.vlgmr.msra.gmra.mrb[18].mxu1 %vm314_vm1, %v1968_v44 }
 0x772   :  { %4940 = vmatpush3.xpose.msk.msra.mxu1 %vm314_vm1, %v1236_v39  ;;  %4941 = vmatprep.mubr.msk.f32.mxu1 %vm5659_vm0, %v5660_v6 }
 0x773   :  { %4949 = vmatprep.subr.mxu1 %v5660_v6 }
 0x775   :  { %4942 = vmatmul.mubr.msk.f32.vlgmr.msra.gmra.mrb[20].mxu1 %vm314_vm1, %v1142_v38 }
 0x776   :  { %4951 = vmatprep.mubr.msk.f32.mxu1 %vm5659_vm0, %v5660_v6  ;;  %4950 = vmatpush3.msra.mxu1 %v6744_v57 }
 0x777   :  { %4959 = vmatprep.subr.mxu1 %v5660_v6 }
 0x803   :  { %v2116_v30 = vpop.f32.mrb[20].mxu0 }
 0x804   :  { %v4938_v35 = vpop.f32.mrb[21].mxu0 }
 0x844   :  { %v2043_v20 = vpop.f32.mrb[18].mxu1 }
 0x845   :  { %v2117_v28 = vadd.f32 %v2116_v30, %v2043_v20  ;;  %v4933_v42 = vpop.f32.mrb[19].mxu1 }
 0x848   :  { %v2192_v48 = vpop.f32.mrb[20].mxu1 }
 0x849   :  { %v2193_v41 = vadd.f32 %v2192_v48, %v6681_v49  ;;  %v4943_v50 = vpop.f32.mrb[21].mxu1 }
 0x84b   :  { %v2196_v51 = vsel %vm314_vm1, %v2193_v41, -inf }
 0x84c   :  { %2197 = vmax.xlane.f32.xlu0 %v2196_v51 }
 0x8d9   :  { %v2198_v52 = vpop.xlane.xlu0 %2197 }
 0x8da   :  { %v2199_v53 = vsub.f32 %v2193_v41, %v2198_v52 }
 0x8dc   :  { %v2200_v54 = vmul.f32 1.442695, %v2199_v53 }
 0x8de   :  { %5608 = vpow2.f32 %v2200_v54 }
 0x8e8   :  { %v5609_v55 = vpop.eup %5608 }
 0x8e9   :  { %v2202_v56 = vsel %vm314_vm1, %v5609_v55, 0.0 }
 0x8ea   :  { %2203 = vadd.xlane.f32.xlu1 %v2202_v56 }
 0x977   :  { %v2204_v61 = vpop.xlane.xlu1 %2203 }
 0x978   :  { %5610 = vrcp.f32 %v2204_v61 }
 0x982   :  { %v5611_v62 = vpop.eup %5610 }
 0x983   :  { %v2206_v0 = vmul.f32 %v5611_v62, %v5609_v55 }
 0x985   :  { %4947 = vmatmul.mubr.msk.f32.vlgmr.msra.gmra.mrb[22].mxu0 %vm314_vm1, %v2206_v0 }
 0x986   :  { %4955 = vmatpush3.xpose.msk.msra.mxu0 %vm314_vm1, %v1538_v1  ;;  %4956 = vmatprep.mubr.msk.f32.mxu0 %vm5659_vm0, %v5660_v6 }
 0x987   :  { %4964 = vmatprep.subr.mxu0 %v5660_v6 }
 0x989   :  { %4957 = vmatmul.mubr.msk.f32.vlgmr.msra.gmra.mrb[24].mxu0 %vm314_vm1, %v1444_v2 }
 0x98a   :  { %4966 = vmatprep.mubr.msk.f32.mxu0 %vm5659_vm0, %v5660_v6  ;;  %4965 = vmatpush3.msra.mxu0 %v6772_v16 }
 0x98b   :  { %4974 = vmatprep.subr.mxu0 %v5660_v6 }
 0xa58   :  { %v2276_v37 = vpop.f32.mrb[22].mxu0 }
 0xa59   :  { %v4948_v43 = vpop.f32.mrb[23].mxu0  ;;  %4952 = vmatmul.mubr.msk.f32.vlgmr.msra.gmra.mrb[22].mxu1 %vm314_vm1, %v2276_v37 }
 0xa5a   :  { %4960 = vmatpush3.msra.mxu1 %v1638_v31  ;;  %4961 = vmatprep.mubr.msk.f32.mxu1 %vm5659_vm0, %v5660_v6 }
 0xa5b   :  { %4969 = vmatprep.subr.mxu1 %v5660_v6 }
 0xa5c   :  { %v2428_v46 = vpop.f32.mrb[24].mxu0 }
 0xa5d   :  { %v2429_v58 = vadd.f32 %v2428_v46, %v6681_v49  ;;  %v4958_v5 = vpop.f32.mrb[25].mxu0 }
 0xa5f   :  { %v2432_v13 = vsel %vm314_vm1, %v2429_v58, -inf }
 0xa60   :  { %2433 = vmax.xlane.f32.xlu0 %v2432_v13 }
 0xaed   :  { %v2434_v18 = vpop.xlane.xlu0 %2433 }
 0xaee   :  { %v2435_v7 = vsub.f32 %v2429_v58, %v2434_v18 }
 0xaf0   :  { %v2436_v8 = vmul.f32 1.442695, %v2435_v7 }
 0xaf2   :  { %5612 = vpow2.f32 %v2436_v8 }
 0xafc   :  { %v5613_v12 = vpop.eup %5612 }
 0xafd   :  { %v2438_v15 = vsel %vm314_vm1, %v5613_v12, 0.0 }
 0xafe   :  { %2439 = vadd.xlane.f32.xlu1 %v2438_v15 }
 0xb2c   :  { %v2351_v59 = vpop.f32.mrb[22].mxu1 }
 0xb2d   :  { %v2355_v22 = vadd.f32 %v2351_v59, %v2117_v28  ;;  %v4953_v23 = vpop.f32.mrb[23].mxu1 }
 0xb2e   :  { %v1445_v23 = vmul.f32 0.35355338, %v6662_v36 }
 0xb8b   :  { %v2440_v24 = vpop.xlane.xlu1 %2439 }
 0xb8c   :  { %5614 = vrcp.f32 %v2440_v24 }
 0xb96   :  { %v5615_v26 = vpop.eup %5614 }
 0xb97   :  { %v2442_v19 = vmul.f32 %v5615_v26, %v5613_v12 }
 0xb99   :  { %4962 = vmatmul.mubr.msk.f32.vlgmr.msra.gmra.mrb[24].mxu1 %vm314_vm1, %v2442_v19 }
 0xb9a   :  { %4970 = vmatpush3.xpose.msk.msra.mxu1 %vm314_vm1, %v6258_v60  ;;  %4971 = vmatprep.mubr.msk.f32.mxu1 %vm5659_vm0, %v5660_v6 }
 0xb9b   :  { %4979 = vmatprep.subr.mxu1 %v5660_v6 }
 0xb9d   :  { %4972 = vmatmul.mubr.msk.f32.vlgmr.msra.gmra.mrb[26].mxu1 %vm314_vm1, %v543_v10 }
 0xb9e   :  { %4980 = vmatpush3.xpose.msk.msra.mxu1 %vm314_vm1, %v6634_v25  ;;  %4981 = vmatprep.mubr.msk.f32.mxu1 %vm5659_vm0, %v5660_v6 }
 0xb9f   :  { %4989 = vmatprep.subr.mxu1 %v5660_v6 }
 0xba1   :  { %4982 = vmatmul.mubr.msk.f32.vlgmr.msra.gmra.mrb[28].mxu1 %vm314_vm1, %v841_v32 }
 0xba2   :  { %4990 = vmatpush3.msra.mxu1 %v6718_v9  ;;  %4991 = vmatprep.mubr.msk.f32.mxu1 %vm5659_vm0, %v5660_v6 }
 0xba3   :  { %4999 = vmatprep.subr.mxu1 %v5660_v6 }
 0xc6c   :  { %v2512_v60 = vpop.f32.mrb[24].mxu1 }
 0xc6d   :  { %v4963_v21 = vpop.f32.mrb[25].mxu1  ;;  %4967 = vmatmul.mubr.msk.f32.vlgmr.msra.gmra.mrb[26].mxu0 %vm314_vm1, %v2512_v60 }
 0xc6e   :  { %4975 = vmatpush3.msra.mxu0 %v6618_v14  ;;  %4976 = vmatprep.mubr.msk.f32.mxu0 %vm5659_vm0, %v5660_v6 }
 0xc6f   :  { %4984 = vmatprep.subr.mxu0 %v5660_v6 }
 0xc70   :  { %v2672_v4 = vpop.f32.mrb[26].mxu1 }
 0xc71   :  { %v2673_v25 = vadd.f32 %v2672_v4, %v6681_v49  ;;  %v4973_v9 = vpop.f32.mrb[27].mxu1 }
 0xc73   :  { %v2676_v34 = vsel %vm314_vm1, %v2673_v25, -inf }
 0xc74   :  { %2677 = vmax.xlane.f32.xlu0 %v2676_v34  ;;  %v2833_v39 = vpop.f32.mrb[28].mxu1 }
 0xc75   :  { %v2834_v44 = vadd.f32 %v2833_v39, %v6681_v49  ;;  %v4983_v47 = vpop.f32.mrb[29].mxu1 }
 0xc77   :  { %v2837_v38 = vsel %vm314_vm1, %v2834_v44, -inf }
 0xc78   :  { %2838 = vmax.xlane.f32.xlu1 %v2837_v38  ;;  %v4051_v38 = vld [vmem:[%s7027_s19] ss:$0 sm:$0xff] }
 0xd01   :  { %v2678_v14 = vpop.xlane.xlu0 %2677 }
 0xd02   :  { %v2679_v30 = vsub.f32 %v2673_v25, %v2678_v14 }
 0xd04   :  { %v2680_v35 = vmul.f32 1.442695, %v2679_v30 }
 0xd05   :  { %v2839_v20 = vpop.xlane.xlu1 %2838 }
 0xd06   :  { %5616 = vpow2.f32 %v2680_v35  ;;  %v2840_v28 = vsub.f32 %v2834_v44, %v2839_v20 }
 0xd08   :  { %v2841_v42 = vmul.f32 1.442695, %v2840_v28 }
 0xd0a   :  { %5618 = vpow2.f32 %v2841_v42 }
 0xd10   :  { %v5617_v48 = vpop.eup %5616 }
 0xd11   :  { %v2682_v41 = vsel %vm314_vm1, %v5617_v48, 0.0 }
 0xd12   :  { %2683 = vadd.xlane.f32.xlu0 %v2682_v41  ;;  %v3619_v41 = vld [vmem:[%s7030_s22] sm:$0xff] }
 0xd14   :  { %v5619_v50 = vpop.eup %5618 }
 0xd15   :  { %v2843_v51 = vsel %vm314_vm1, %v5619_v50, 0.0 }
 0xd16   :  { %2844 = vadd.xlane.f32.xlu1 %v2843_v51 }
 0xd40   :  { %v2587_v52 = vpop.f32.mrb[26].mxu0 }
 0xd41   :  { %v6806_v53 = vadd.f32 %v2587_v52, %v2355_v22  ;;  %v4968_v54 = vpop.f32.mrb[27].mxu0  ;;  %v3621_v52 = vld [vmem:[%s7030_s22 + $0x10] sm:$0xff] }
 0xd42   :  { %v3623_v54 = vld [vmem:[%s7030_s22 + $0x20] sm:$0xff] }
 0xd43   :  { %v2598_v20 = vadd.f32 %v4051_v38, %v6806_v53 }
 0xd9f   :  { %v2684_v55 = vpop.xlane.xlu0 %2683 }
 0xda0   :  { %5620 = vrcp.f32 %v2684_v55  ;;  %v3624_v55 = vld [vmem:[%s7030_s22 + $0x28] sm:$0xff] }
 0xda3   :  { %v2845_v56 = vpop.xlane.xlu1 %2844 }
 0xda4   :  { %5622 = vrcp.f32 %v2845_v56  ;;  %v5548_v56 = vpack.c.bf16 %v3624_v55, %v3623_v54  ;;  %v4073_v54 = vld [vmem:[%s7029_s21] ss:$0 sm:$0xff] }
 0xdaa   :  { %v5621_v61 = vpop.eup %5620 }
 0xdab   :  { %v2686_v62 = vmul.f32 %v5621_v61, %v5617_v48  ;;  %v3540_v48 = vld [vmem:[%s7060_s16] sm:$0xff]  ;;  %v3625_v61 = vld [vmem:[%s7030_s22 + $0x30] sm:$0xff] }
 0xdad   :  { %4977 = vmatmul.mubr.msk.f32.vlgmr.msra.gmra.mrb[28].mxu0 %vm314_vm1, %v2686_v62  ;;  %v3626_v62 = vld [vmem:[%s7030_s22 + $0x38] sm:$0xff] }
 0xdae   :  { %v5623_v63 = vpop.eup %5622  ;;  %4985 = vmatpush3.msra.mxu0 %v6621_v17  ;;  %4986 = vmatprep.mubr.msk.f32.mxu0 %vm5659_vm0, %v5660_v6 }
 0xdaf   :  { %v2847_v0 = vmul.f32 %v5623_v63, %v5619_v50  ;;  %4994 = vmatprep.subr.mxu0 %v5660_v6  ;;  %v3620_v50 = vld [vmem:[%s7030_s22 + $0x8] sm:$0xff]  ;;  %v5551_v63 = vpack.c.bf16 %v3626_v62, %v3625_v61  ;;  %v3650_v61 = vld [vmem:[%s7032_s24 + $0x70] sm:$0xff]  ;;  %v3651_v62 = vld [vmem:[%s7032_s24 + $0x78] sm:$0xff] }
 0xdb0   :  { %v5542_v51 = vpack.c.bf16 %v3620_v50, %v3619_v41 }
 0xdb1   :  { %4987 = vmatmul.mubr.msk.f32.vlgmr.msra.gmra.mrb[30].mxu0 %vm314_vm1, %v2847_v0  ;;  %v3627_v0 = vld [vmem:[%s7030_s22 + $0x40] sm:$0xff] }
 0xdb2   :  { %4995 = vmatpush3.msra.mxu0 %v6708_v29  ;;  %4996 = vmatprep.mubr.msk.f32.mxu0 %vm5659_vm0, %v5660_v6  ;;  %v1143_v29 = vmul.f32 0.35355338, %v6657_v33 }
 0xdb3   :  { %5004 = vmatprep.subr.mxu0 %v5660_v6 }
 0xe80   :  { %v2756_v1 = vpop.f32.mrb[28].mxu0 }
 0xe81   :  { %v4978_v2 = vpop.f32.mrb[29].mxu0  ;;  %4997 = vmatmul.mubr.msk.f32.vlgmr.msra.gmra.mrb[32].mxu0 %vm314_vm1, %v2756_v1  ;;  %v3628_v1 = vld [vmem:[%s7030_s22 + $0x48] sm:$0xff] }
 0xe82   :  { %5005 = vmatpush3.msra.mxu0 %v6669_v40  ;;  %5006 = vmatprep.mubr.msk.f32.mxu0 %vm5659_vm0, %v5660_v6  ;;  %v5554_v2 = vpack.c.bf16 %v3628_v1, %v3627_v0  ;;  %v4074_v0 = vld [vmem:[%s7031_s23] ss:$0 sm:$0xff] }
 0xe83   :  { %5014 = vmatprep.subr.mxu0 %v5660_v6 }
 0xe84   :  { %v2917_v17 = vpop.f32.mrb[30].mxu0 }
 0xe85   :  { %v4988_v31 = vpop.f32.mrb[31].mxu0  ;;  %4992 = vmatmul.mubr.msk.f32.vlgmr.msra.gmra.mrb[30].mxu1 %vm314_vm1, %v2917_v17  ;;  %v3629_v17 = vld [vmem:[%s7030_s22 + $0x50] sm:$0xff] }
 0xe86   :  { %5000 = vmatpush3.xpose.msk.msra.mxu1 %vm314_vm1, %v6637_v27  ;;  %5001 = vmatprep.mubr.msk.f32.mxu1 %vm5659_vm0, %v5660_v6  ;;  %v3630_v31 = vld [vmem:[%s7030_s22 + $0x58] sm:$0xff] }
 0xe87   :  { %5009 = vmatprep.subr.mxu1 %v5660_v6 }
 0xe89   :  { %5002 = vmatmul.mubr.msk.f32.vlgmr.msra.gmra.mrb[32].mxu1 %vm314_vm1, %v1143_v29  ;;  %v5557_v29 = vpack.c.bf16 %v3630_v31, %v3629_v17 }
 0xe8a   :  { %5010 = vmatpush3.msra.mxu1 %v6744_v57  ;;  %5011 = vmatprep.mubr.msk.f32.mxu1 %vm5659_vm0, %v5660_v6 }
 0xe8b   :  { %5019 = vmatprep.subr.mxu1 %v5660_v6 }
 0xf54   :  { %v3064_v40 = vpop.f32.mrb[32].mxu0 }
 0xf55   :  { %v4998_v37 = vpop.f32.mrb[33].mxu0 }
 0xf56   :  { %v3632_v37 = vld [vmem:[%s7030_s22 + $0x68] sm:$0xff] }
 0xf58   :  { %v2991_v43 = vpop.f32.mrb[30].mxu1 }
 0xf59   :  { %v3065_v27 = vadd.f32 %v3064_v40, %v2991_v43  ;;  %v4993_v46 = vpop.f32.mrb[31].mxu1  ;;  %v3631_v40 = vld [vmem:[%s7030_s22 + $0x60] sm:$0xff] }
 0xf5a   :  { %v5560_v43 = vpack.c.bf16 %v3632_v37, %v3631_v40  ;;  %v3634_v46 = vld [vmem:[%s7030_s22 + $0x78] sm:$0xff]  ;;  %v4075_v40 = vld [vmem:[%s7033_s25] ss:$0 sm:$0xff] }
 0xf5c   :  { %v3140_v58 = vpop.f32.mrb[32].mxu1 }
 0xf5d   :  { %v3141_v5 = vadd.f32 %v3140_v58, %v6681_v49  ;;  %v5003_v33 = vpop.f32.mrb[33].mxu1 }
 0xf5e   :  { %v3637_v33 = vld [vmem:[%s7032_s24 + $0x8] sm:$0xff] }
 0xf5f   :  { %v3144_v13 = vsel %vm314_vm1, %v3141_v5, -inf }
 0xf60   :  { %3145 = vmax.xlane.f32.xlu0 %v3144_v13  ;;  %v3638_v13 = vld [vmem:[%s7032_s24 + $0x10] sm:$0xff] }
 0xfed   :  { %v3146_v18 = vpop.xlane.xlu0 %3145 }
 0xfee   :  { %v3147_v7 = vsub.f32 %v3141_v5, %v3146_v18  ;;  %v3636_v5 = vld [vmem:[%s7032_s24] sm:$0xff] }
 0xfef   :  { %v5566_v18 = vpack.c.bf16 %v3637_v33, %v3636_v5 }
 0xff0   :  { %v3148_v57 = vmul.f32 1.442695, %v3147_v7  ;;  %v3639_v7 = vld [vmem:[%s7032_s24 + $0x18] sm:$0xff] }
 0xff2   :  { %5624 = vpow2.f32 %v3148_v57  ;;  %v5569_v57 = vpack.c.bf16 %v3639_v7, %v3638_v13 }
 0xffc   :  { %v5625_v8 = vpop.eup %5624 }
 0xffd   :  { %v3150_v12 = vsel %vm314_vm1, %v5625_v8, 0.0 }
 0xffe   :  { %3151 = vadd.xlane.f32.xlu1 %v3150_v12  ;;  %v3641_v12 = vld [vmem:[%s7032_s24 + $0x28] sm:$0xff] }
0x108b   :  { %v3152_v15 = vpop.xlane.xlu1 %3151 }
0x108c   :  { %5626 = vrcp.f32 %v3152_v15 }
0x1096   :  { %v5627_v59 = vpop.eup %5626 }
0x1097   :  { %v3154_v22 = vmul.f32 %v5627_v59, %v5625_v8  ;;  %v3640_v8 = vld [vmem:[%s7032_s24 + $0x20] sm:$0xff]  ;;  %v3642_v59 = vld [vmem:[%s7032_s24 + $0x30] sm:$0xff] }
0x1098   :  { %v5572_v15 = vpack.c.bf16 %v3641_v12, %v3640_v8 }
0x1099   :  { %5007 = vmatmul.mubr.msk.f32.vlgmr.msra.gmra.mrb[34].mxu0 %vm314_vm1, %v3154_v22  ;;  %v3643_v22 = vld [vmem:[%s7032_s24 + $0x38] sm:$0xff] }
0x109a   :  { %5015 = vmatpush3.xpose.msk.msra.mxu0 %vm314_vm1, %v6677_v45  ;;  %5016 = vmatprep.mubr.msk.f32.mxu0 %vm5659_vm0, %v5660_v6 }
0x109b   :  { %5024 = vmatprep.subr.mxu0 %v5660_v6 }
0x109d   :  { %5017 = vmatmul.mubr.msk.f32.vlgmr.msra.gmra.mrb[36].mxu0 %vm314_vm1, %v1445_v23  ;;  %v5575_v23 = vpack.c.bf16 %v3643_v22, %v3642_v59 }
0x109e   :  { %5025 = vmatpush3.msra.mxu0 %v6772_v16  ;;  %5026 = vmatprep.mubr.msk.f32.mxu0 %vm5659_vm0, %v5660_v6 }
0x109f   :  { %5541 = vmatprep.subr.bf16.mxu0 %v5658_v3 }
0x116c   :  { %v3224_v24 = vpop.f32.mrb[34].mxu0 }
0x116d   :  { %v5008_v26 = vpop.f32.mrb[35].mxu0  ;;  %5012 = vmatmul.mubr.msk.f32.vlgmr.msra.gmra.mrb[34].mxu1 %vm314_vm1, %v3224_v24  ;;  %v3644_v24 = vld [vmem:[%s7032_s24 + $0x40] sm:$0xff] }
0x116e   :  { %5020 = vmatpush3.msra.mxu1 %v6695_v11  ;;  %5021 = vmatprep.mubr.msk.f32.mxu1 %vm5659_vm0, %v5660_v6  ;;  %v3645_v26 = vld [vmem:[%s7032_s24 + $0x48] sm:$0xff] }
0x116f   :  { %5538 = vmatprep.subr.bf16.mxu1 %v5658_v3 }
0x1170   :  { %v3375_v36 = vpop.f32.mrb[36].mxu0 }
0x1171   :  { %v3376_v45 = vadd.f32 %v3375_v36, %v6681_v49  ;;  %v5018_v16 = vpop.f32.mrb[37].mxu0  ;;  %v5578_v36 = vpack.c.bf16 %v3645_v26, %v3644_v24 }
0x1172   :  { %v3647_v16 = vld [vmem:[%s7032_s24 + $0x58] sm:$0xff] }
0x1173   :  { %v3379_v19 = vsel %vm314_vm1, %v3376_v45, -inf }
0x1174   :  { %3380 = vmax.xlane.f32.xlu0 %v3379_v19 }
0x1201   :  { %v3381_v10 = vpop.xlane.xlu0 %3380 }
0x1202   :  { %v3382_v32 = vsub.f32 %v3376_v45, %v3381_v10  ;;  %v3646_v45 = vld [vmem:[%s7032_s24 + $0x50] sm:$0xff]  ;;  %v3648_v10 = vld [vmem:[%s7032_s24 + $0x60] sm:$0xff] }
0x1203   :  { %v5581_v19 = vpack.c.bf16 %v3647_v16, %v3646_v45 }
0x1204   :  { %v3383_v60 = vmul.f32 1.442695, %v3382_v32  ;;  %v3649_v32 = vld [vmem:[%s7032_s24 + $0x68] sm:$0xff]  ;;  %s5634_s24 = scalar_lea.vmem %s3852_s0, 128 }
0x1205   :  { %p5635_p0 = scmp.ne.s32.totalorder %s3852_s0, %s5634_s24  ;;  %p5640_p2 = scmp.lt.s32.totalorder %s5634_s24, %s5634_s24 }
0x1206   :  { %5628 = vpow2.f32 %v3383_v60  ;;  %v5584_v60 = vpack.c.bf16 %v3649_v32, %v3648_v10 }
0x1207   :  { %p5641_p3 = por %p5640_p2, %p5639_p1 }
0x1209   :  { %p5642_p4 = pnand %p5641_p3, %p5635_p0 }
0x1210   :  { %v5629_v21 = vpop.eup %5628 }
0x1211   :  { %v3385_v4 = vsel %vm314_vm1, %v5629_v21, 0.0 }
0x1212   :  { %3386 = vadd.xlane.f32.xlu1 %v3385_v4 }
0x1240   :  { %v3298_v11 = vpop.f32.mrb[34].mxu1 }
0x1241   :  { %v3302_v25 = vadd.f32 %v3298_v11, %v3065_v27  ;;  %v5013_v9 = vpop.f32.mrb[35].mxu1  ;;  %v3633_v27 = vld [vmem:[%s7030_s22 + $0x70] sm:$0xff] }
0x1242   :  { %v5563_v58 = vpack.c.bf16 %v3634_v46, %v3633_v27 }
0x129f   :  { %v3387_v34 = vpop.xlane.xlu1 %3386 }
0x12a0   :  { %5630 = vrcp.f32 %v3387_v34 }
0x12aa   :  { %v5631_v39 = vpop.eup %5630 }
0x12ab   :  { %v3389_v44 = vmul.f32 %v5631_v39, %v5629_v21 }
0x12ad   :  { %5022 = vmatmul.mubr.msk.f32.vlgmr.msra.gmra.mrb[36].mxu1 %vm314_vm1, %v3389_v44 }
0x12ae   :  { %5033 = vmatprep.mubr.msk.f32.mxu1 %vm5659_vm0, %v5660_v6 }
0x1380   :  { %v3459_v49 = vpop.f32.mrb[36].mxu1 }
0x1381   :  { %v5023_v47 = vpop.f32.mrb[37].mxu1  ;;  %5027 = vmatmul.mubr.msk.f32.vlgmr.msra.gmra.mrb[38].mxu0 %vm314_vm1, %v3459_v49 }
0x1382   :  { %5068 = vmatprep.mubr.msk.f32.mxu0 %vm5659_vm0, %v5660_v6  ;;  %5543 = vmatpush3.bf16.msra.mxu0 %v5542_v51 }
0x1383   :  { %5544 = vmatprep.subr.bf16.mxu0 %v5658_v3 }
0x1454   :  { %v3533_v14 = vpop.f32.mrb[38].mxu0 }
0x1455   :  { %v3537_v30 = vadd.f32 %v3533_v14, %v3302_v25  ;;  %v5028_v35 = vpop.f32.mrb[39].mxu0 }
0x1457   :  { %v3538_v28 = vadd.f32 %v4051_v38, %v3537_v30 }
0x1459   :  { %v5539_v42 = vpack.c.bf16 %v3538_v28, %v2598_v20 }
0x145b   :  { %5540 = vmatpush3.bf16.msra.mxu1 %v5539_v42 }
0x145c   :  { %5565 = vmatprep.subr.bf16.mxu1 %v5658_v3 }
0x145e   :  { %5034 = vmatmul.mubr.msk.f32.vlgmr.msra.gmra.mrb[38].mxu1 %vm3543_vm3, %v3540_v48 }
0x145f   :  { %5103 = vmatprep.mubr.msk.f32.mxu1 %vm5659_vm0, %v5660_v6  ;;  %v3622_v6 = vld [vmem:[%s7030_s22 + $0x18] sm:$0xff]  ;;  %5567 = vmatpush3.bf16.msra.mxu1 %v5566_v18 }
0x1460   :  { %v5545_v53 = vpack.c.bf16 %v3622_v6, %v3621_v52  ;;  %5568 = vmatprep.subr.bf16.mxu1 %v5658_v3  ;;  %v4072_v6 = vld [vmem:[%s7028_s20] ss:$0 sm:$0xff] }
0x1462   :  { %5546 = vmatpush3.bf16.msra.mxu0 %v5545_v53 }
0x1463   :  { %5547 = vmatprep.subr.bf16.mxu0 %v5658_v3  ;;  %5570 = vmatpush3.bf16.msra.mxu1 %v5569_v57 }
0x1464   :  { %5571 = vmatprep.subr.bf16.mxu1 %v5658_v3 }
0x1466   :  { %5549 = vmatpush3.bf16.msra.mxu0 %v5548_v56 }
0x1467   :  { %5550 = vmatprep.subr.bf16.mxu0 %v5658_v3  ;;  %5573 = vmatpush3.bf16.msra.mxu1 %v5572_v15 }
0x1468   :  { %5574 = vmatprep.subr.bf16.mxu1 %v5658_v3 }
0x146a   :  { %5552 = vmatpush3.bf16.msra.mxu0 %v5551_v63  ;;  %v5587_v63 = vpack.c.bf16 %v3651_v62, %v3650_v61 }
0x146b   :  { %5553 = vmatprep.subr.bf16.mxu0 %v5658_v3  ;;  %5576 = vmatpush3.bf16.msra.mxu1 %v5575_v23 }
0x146c   :  { %5577 = vmatprep.subr.bf16.mxu1 %v5658_v3 }
0x146e   :  { %5555 = vmatpush3.bf16.msra.mxu0 %v5554_v2 }
0x146f   :  { %5556 = vmatprep.subr.bf16.mxu0 %v5658_v3  ;;  %5579 = vmatpush3.bf16.msra.mxu1 %v5578_v36 }
0x1470   :  { %5580 = vmatprep.subr.bf16.mxu1 %v5658_v3 }
0x1472   :  { %5558 = vmatpush3.bf16.msra.mxu0 %v5557_v29 }
0x1473   :  { %5559 = vmatprep.subr.bf16.mxu0 %v5658_v3  ;;  %5582 = vmatpush3.bf16.msra.mxu1 %v5581_v19 }
0x1474   :  { %5583 = vmatprep.subr.bf16.mxu1 %v5658_v3 }
0x1476   :  { %5561 = vmatpush3.bf16.msra.mxu0 %v5560_v43 }
0x1477   :  { %5562 = vmatprep.subr.bf16.mxu0 %v5658_v3  ;;  %5585 = vmatpush3.bf16.msra.mxu1 %v5584_v60 }
0x1478   :  { %5586 = vmatprep.subr.bf16.mxu1 %v5658_v3 }
0x147a   :  { %5564 = vmatpush3.bf16.msra.mxu0 %v5563_v58 }
0x147b   :  { %5588 = vmatpush3.bf16.msra.mxu1 %v5587_v63 }
0x1531   :  { %v3613_v21 = vpop.f32.mrb[38].mxu1 }
0x1532   :  { %v3653_v4 = vrot.slane %v3613_v21, 4  ;;  %v3660_v11 = vmul.f32 %v3613_v21, %v3613_v21  ;;  %v5035_v25 = vpop.f32.mrb[39].mxu1 }
0x1534   :  { %v3654_v9 = vadd.f32 %v3653_v4, %v3613_v21  ;;  %v3661_v34 = vrot.slane %v3660_v11, 4 }
0x1536   :  { %v3655_v39 = vrot.slane %v3654_v9, 2  ;;  %v3662_v44 = vadd.f32 %v3661_v34, %v3660_v11 }
0x1538   :  { %v3656_v49 = vadd.f32 %v3655_v39, %v3654_v9  ;;  %v3663_v47 = vrot.slane %v3662_v44, 2 }
0x153a   :  { %v3657_v38 = vrot.slane %v3656_v49, 1  ;;  %v3664_v14 = vadd.f32 %v3663_v47, %v3662_v44 }
0x153c   :  { %v3658_v30 = vadd.f32 %v3657_v38, %v3656_v49  ;;  %v3665_v35 = vrot.slane %v3664_v14, 1 }
0x153e   :  { %v3659_v20 = vmul.f32 0.125, %v3658_v30  ;;  %v3666_v28 = vadd.f32 %v3665_v35, %v3664_v14 }
0x1540   :  { %v3667_v42 = vmul.f32 0.125, %v3666_v28  ;;  %v3668_v48 = vmul.f32 %v3659_v20, %v3659_v20  ;;  %v3671_v51 = vsub.f32 %v3613_v21, %v3659_v20 }
0x1542   :  { %v3669_v41 = vsub.f32 %v3667_v42, %v3668_v48 }
0x1544   :  { %v3670_v3 = vmax.f32 %v3669_v41, 0.0 }
0x1546   :  { %v3672_v50 = vadd.f32 1e-05, %v3670_v3 }
0x1548   :  { %5632 = vrsqrt.f32 %v3672_v50 }
0x1552   :  { %v5633_v52 = vpop.eup %5632 }
0x1553   :  { %v3674_v53 = vmul.f32 %v5633_v52, %v3671_v51 }
0x1555   :  { %v3681_v55 = vmul.f32 %v4072_v6, %v3674_v53 }
0x1557   :  { %v3688_v56 = vadd.f32 %v4073_v54, %v3681_v55 }
0x1559   :  { %5069 = vmatmul.mubr.f32.vlgmr.msra.gmra.mrb[40].mxu0 %v3688_v56 }
0x162c   :  { %v3761_v1 = vpop.f32.mrb[40].mxu0 }
0x162d   :  { %v3762_v2 = vadd.f32 %v4074_v0, %v3761_v1  ;;  %v5070_v17 = vpop.f32.mrb[41].mxu0 }
0x162f   :  { %v3765_v31 = vmax.f32 %v3762_v2, 0.0 }
0x1631   :  { %5104 = vmatmul.mubr.f32.vlgmr.msra.gmra.mrb[40].mxu1 %v3765_v31 }
0x1704   :  { %v3832_v29 = vpop.f32.mrb[40].mxu1 }
0x1705   :  { %v3836_v37 = vadd.f32 %v3832_v29, %v3613_v21  ;;  %v5105_v43 = vpop.f32.mrb[41].mxu1 }
0x1707   :  { %v3843_v27 = vadd.f32 %v4075_v40, %v3836_v37 }
0x1709   :  { %3844 = vst [vmem:[#allocation3] sm:$0xff] %v3843_v27 }
0x170a   :  { %5645 = shalt.err (!%p5642_p4)
}
0x170b   :  { %s5646_s16 = scalar_lea.hbm %s7034_s26, 128 }
0x170c   :  { %p5647_p5 = scmp.ne.s32.totalorder %s7034_s26, %s5646_s16  ;;  %p5650_p6 = scmp.lt.u32.totalorder %s5646_s16, %s7034_s26 }
0x170e   :  { %p5652_p7 = pnand %p5650_p6, %p5647_p5 }
0x1710   :  { %5655 = shalt.err (!%p5652_p7)
}
0x1711   :  { %3854 = dma.vmem_to_hbm [thread:$0]  %s3852_s0, 128, %s7034_s26, [#allocation4]  }
0x1712   :  { %5656 = dma.done.wait [#allocation4], 128  }
0x1713   :  { %5657 = vsyncadd [#allocation4], 4294967168 }
0x1714   :  { %3858 = vsyncpa [#allocation4], 1 }

</bundles_post_ra>
